<compile_context>
chip_gen: v6e
topology: v6e:2x2x1
jax: 0.10.0
libtpu: 0.0.40
codegen_flags: <defaults>
</compile_context>

<pallas_src>
import functools

import jax
import jax.numpy as jnp
from jax import lax
from jax.experimental import pallas as pl
from jax.experimental.pallas import tpu as pltpu


# ----------------------------- kernel ---------------------------------------
def dual_attn_kernel(inv_scale, inv_page_scale,
                     ids_ref,   # (Bt*P*L, 1) int32   token ids (tokens on sublanes)
                     sl_ref,    # (Bt, P)     int32   seq_lengths
                     np_ref,    # (Bt, 1)     int32   num_pages
                     th_ref,    # (vocab, E)  bf16    embedding table, high bf16 part
                     tl_ref,    # (vocab, E)  bf16    embedding table, low  bf16 part
                     v_ref,     # (1, E)      f32     V (token scoring vector)
                     w_ref,     # (1, E)      f32     W (page scoring vector)
                     attn_ref,  # (Bt, P, L)  f32
                     wvec_ref,  # (Bt, P, E)  f32
                     slab_ref): # (Bt, E+2P)  f32     [final_vec | page_attn | page_scores]
    Bt, P = sl_ref.shape
    L = attn_ref.shape[2]
    vocab, E = th_ref.shape
    T = Bt * P * L

    # ---- fused embedding gather: one_hot(ids) @ table on the MXU ----
    # The table was pre-split (wrapper) into hi/lo bf16 components, so the two
    # native bf16 MXU passes reconstruct the f32 embeddings to ~1e-6 rel err.
    ids = ids_ref[...]                                          # (T, 1)
    vix = lax.broadcasted_iota(jnp.int32, (T, vocab), 1)
    onehot = (ids == vix).astype(jnp.float32).astype(jnp.bfloat16)   # (T, vocab)
    x_flat = (jnp.dot(onehot, th_ref[...], preferred_element_type=jnp.float32)
              + jnp.dot(onehot, tl_ref[...], preferred_element_type=jnp.float32))
    # Tile-preserving split of the token axis (L == sublane tile in the demo).
    x = x_flat.reshape(Bt, P, L, E)                             # (Bt, P, L, E)

    # ---- token scores: <x, V> * (1/scale) ----
    v = v_ref[...].reshape(1, 1, 1, E)
    scores = jnp.sum(x * v, axis=-1) * inv_scale                # (Bt, P, L)

    # ---- token mask: only pages j < num_pages get their padding masked ----
    sl = sl_ref[...]                                            # (Bt, P)
    npg = np_ref[...]                                           # (Bt, 1)
    t_idx = lax.broadcasted_iota(jnp.int32, (Bt, P, L), 2)
    p_idx = lax.broadcasted_iota(jnp.int32, (Bt, P, L), 1)
    tok_mask = jnp.logical_and(p_idx < npg[:, :, None], t_idx >= sl[:, :, None])
    scores = jnp.where(tok_mask, -999.0, scores)

    # ---- softmax over tokens (EUP reciprocal + 1 Newton step, no divide) ----
    m = jnp.max(scores, axis=-1, keepdims=True)
    e = jnp.exp(scores - m)
    denom = jnp.sum(e, axis=-1, keepdims=True)
    r = pl.reciprocal(denom, approx=True)
    r = r * (2.0 - denom * r)                                   # Newton refine
    attn = e * r                                                # (Bt, P, L)
    attn_ref[...] = attn

    # ---- webpage vectors: attn-weighted sum over tokens (VPU + sublane reduce) ----
    wv = jnp.sum(attn[..., None] * x, axis=2)                   # (Bt, P, E)
    wvec_ref[...] = wv

    # ---- page scores: <webpage_vec, W> * (1/page_scale), masked ----
    w = w_ref[...].reshape(1, 1, E)
    pz = jnp.sum(wv * w, axis=-1) * inv_page_scale              # (Bt, P)
    pg_idx = lax.broadcasted_iota(jnp.int32, (Bt, P), 1)
    pz = jnp.where(pg_idx >= npg, -9999.0, pz)

    # ---- sparsemax over pages (sort-free O(P^2), fully batched) ----
    z_i = pz[:, :, None]                                        # (Bt, P, 1)
    z_j = pz[:, None, :]                                        # (Bt, 1, P)
    geq = (z_j >= z_i).astype(jnp.float32)                      # (Bt, P, P)
    k_i = jnp.sum(geq, axis=-1)                                 # (Bt, P)
    s_i = jnp.sum(geq * z_j, axis=-1)                           # (Bt, P)
    support = ((1.0 + k_i * pz) > s_i).astype(jnp.float32)      # (Bt, P)
    k_star = jnp.sum(support, axis=-1, keepdims=True)           # (Bt, 1)
    s_star = jnp.sum(support * pz, axis=-1, keepdims=True)
    tau = (s_star - 1.0) / k_star                               # (Bt, 1)
    p_attn = jnp.maximum(pz - tau, 0.0)                         # (Bt, P)

    # ---- final vector ----
    fvec = jnp.sum(p_attn[:, :, None] * wv, axis=1)             # (Bt, E)

    # ---- packed small outputs: [final_vec | page_attn | page_scores] ----
    slab_ref[:, 0:E] = fvec
    slab_ref[:, E:E + P] = p_attn
    slab_ref[:, E + P:E + 2 * P] = pz


# ----------------------------- tiling / VMEM budgeting ----------------------
def _ceil_to(x, m):
    return ((x + m - 1) // m) * m


def _choose_tile(B, P, L, E, vocab):
    """Pick batch tile Bt from the (8,128)-padded VMEM working set + VMEM limit."""
    lane = lambda n: _ceil_to(max(n, 1), 128)
    sub8 = lambda n: _ceil_to(max(n, 1), 8)
    f32, bf16 = 4, 2
    tok = P * L
    # double-buffered I/O blocks, per batch element (VMEM-padded bytes)
    io_b = 2 * (f32 * tok * lane(1)                 # token-id column block
                + f32 * lane(P) + f32 * lane(1)     # seq_lengths, num_pages
                + f32 * sub8(P) * lane(L)           # attn out
                + f32 * sub8(P) * lane(E)           # webpage_vec out
                + f32 * lane(E + 2 * P))            # packed slab out
    # live in-kernel temporaries, per batch element (generous estimate)
    tmp_b = (bf16 * tok * lane(vocab)               # one-hot
             + 4 * f32 * tok * lane(E)              # gathered x / products
             + 4 * f32 * sub8(P) * lane(L)          # scores / exp / attn
             + 3 * f32 * sub8(P) * lane(E)          # webpage-vec temps
             + 2 * f32 * sub8(P) * lane(P))         # sparsemax pairwise
    per_b = io_b + tmp_b
    fixed = (2 * (2 * bf16 * _ceil_to(vocab, 16) * lane(E)     # two bf16 tables (x2 buf)
                  + 2 * f32 * 8 * lane(E))                     # V, W
             + (1 << 20))                                      # slack

    # generation-aware VMEM budget (v5e/v6e: 128 MiB physical, v7x: 64 MiB/TC)
    try:
        vmem_phys = int(pltpu.get_tpu_info().vmem_capacity_bytes)
    except Exception:                       # unknown -> assume tightest (v7x)
        vmem_phys = 64 << 20
    budget = min(vmem_phys // 3, 40 << 20)
    bt_cap = max(8, ((budget - fixed) // per_b) // 8 * 8)

    B8 = _ceil_to(B, 8)
    Bt = min(bt_cap, B8)
    # Guarantee a few grid steps (pipeline ramp + both v7x TensorCores get work).
    target_steps = 4
    if Bt > 8 and B8 // Bt < target_steps:
        Bt = max(8, min(Bt, _ceil_to(-(-B8 // target_steps), 8)))
    Bp = -(-B // Bt) * Bt
    vmem_limit = int(min(max(2 * (per_b * Bt + fixed), 32 << 20),
                         vmem_phys - (8 << 20)))
    return Bt, Bp, vmem_limit


# ----------------------------- wrapper ---------------------------------------
def dual_attn_forward(emb_table, V, W, dec_w, seq_ids, num_pages, seq_lengths,
                      *, scale=10.0, page_scale=10.0):
    """emb_table: (vocab, E); V,W: (E,1); dec_w: (label, E) (torch Linear layout)."""
    B, P, L = seq_ids.shape
    vocab, E = emb_table.shape

    Bt, Bp, vmem_limit = _choose_tile(B, P, L, E, vocab)
    pad_b = Bp - B
    grid = (Bp // Bt,)

    # glue: pad batch, present token ids as a (tokens, 1) column, split table
    ids_col = jnp.pad(seq_ids.astype(jnp.int32),
                      ((0, pad_b), (0, 0), (0, 0))).reshape(Bp * P * L, 1)
    sl_p = jnp.pad(seq_lengths.astype(jnp.int32), ((0, pad_b), (0, 0)))
    np_p = jnp.pad(num_pages.astype(jnp.int32), ((0, pad_b),)).reshape(Bp, 1)

    tbl_f32 = emb_table.astype(jnp.float32)
    tbl_hi = tbl_f32.astype(jnp.bfloat16)
    tbl_lo = (tbl_f32 - tbl_hi.astype(jnp.float32)).astype(jnp.bfloat16)
    v2 = V.astype(jnp.float32).reshape(1, E)
    w2 = W.astype(jnp.float32).reshape(1, E)

    kernel = functools.partial(dual_attn_kernel,
                               1.0 / float(scale), 1.0 / float(page_scale))

    K = E + 2 * P
    out_shape = (
        jax.ShapeDtypeStruct((Bp, P, L), jnp.float32),   # attn
        jax.ShapeDtypeStruct((Bp, P, E), jnp.float32),   # webpage_vec
        jax.ShapeDtypeStruct((Bp, K), jnp.float32),      # [final_vec|page_attn|page_scores]
    )

    grid_spec = pltpu.PrefetchScalarGridSpec(
        num_scalar_prefetch=0,
        grid=grid,
        in_specs=[
            pl.BlockSpec((Bt * P * L, 1), lambda b: (b, 0)),   # token ids
            pl.BlockSpec((Bt, P), lambda b: (b, 0)),           # seq_lengths
            pl.BlockSpec((Bt, 1), lambda b: (b, 0)),           # num_pages
            pl.BlockSpec((vocab, E), lambda b: (0, 0)),        # table hi (bf16)
            pl.BlockSpec((vocab, E), lambda b: (0, 0)),        # table lo (bf16)
            pl.BlockSpec((1, E), lambda b: (0, 0)),            # V
            pl.BlockSpec((1, E), lambda b: (0, 0)),            # W
        ],
        out_specs=[
            pl.BlockSpec((Bt, P, L), lambda b: (b, 0, 0)),
            pl.BlockSpec((Bt, P, E), lambda b: (b, 0, 0)),
            pl.BlockSpec((Bt, K), lambda b: (b, 0)),
        ],
    )

    attn_p, wvec_p, slab_p = pl.pallas_call(
        kernel,
        out_shape=out_shape,
        grid_spec=grid_spec,
        compiler_params=pltpu.CompilerParams(
            dimension_semantics=("parallel",),
            vmem_limit_bytes=vmem_limit),
    )(ids_col, sl_p, np_p, tbl_hi, tbl_lo, v2, w2)

    # un-pad, unpack the slab and finish the tiny decoder head in XLA
    attn = attn_p[:B][:, :, None, :]                 # (B, P, 1, L)
    wvec = wvec_p[:B]                                # (B, P, E)
    fvec = slab_p[:B, 0:E]                           # (B, E)
    pattn = slab_p[:B, E:E + P][:, None, :]          # (B, 1, P)
    pscores = slab_p[:B, E + P:E + 2 * P]            # (B, P)
    senti = fvec @ dec_w.astype(jnp.float32).T       # (B, label)
    probs = jax.nn.sigmoid(senti)
    return probs, senti, attn, pattn, fvec, pscores, wvec


# ----------------------- pure-JAX reference (for checking) -------------------
def reference_forward(emb_table, V, W, dec_w, seq_ids, num_pages, seq_lengths,
                      *, scale=10.0, page_scale=10.0):
    B, P, L = seq_ids.shape
    emb = emb_table[seq_ids].astype(jnp.float32)
    scores = jnp.einsum('bple,e->bpl', emb, V[:, 0]) / scale
    t_idx = jnp.arange(L)[None, None, :]
    p_idx = jnp.arange(P)[None, :, None]
    mask = (p_idx < num_pages[:, None, None]) & (t_idx >= seq_lengths[:, :, None])
    scores = jnp.where(mask, -999.0, scores)
    attn = jax.nn.softmax(scores, axis=-1)
    wv = jnp.einsum('bpl,bple->bpe', attn, emb)
    pz = jnp.einsum('bpe,e->bp', wv, W[:, 0]) / page_scale
    pmask = jnp.arange(P)[None, :] >= num_pages[:, None]
    pz = jnp.where(pmask, -9999.0, pz)
    # sparsemax (sorted formulation)
    zs = -jnp.sort(-pz, axis=-1)
    cs = jnp.cumsum(zs, axis=-1)
    k = jnp.arange(1, P + 1)[None, :].astype(jnp.float32)
    cond = 1.0 + k * zs > cs
    kz = jnp.sum(cond, axis=-1).astype(jnp.int32)
    s_sel = jnp.take_along_axis(cs, kz[:, None] - 1, axis=-1)
    tau = (s_sel - 1.0) / kz[:, None].astype(jnp.float32)
    pattn = jnp.maximum(pz - tau, 0.0)
    fvec = jnp.einsum('bp,bpe->be', pattn, wv)
    senti = fvec @ dec_w.T
    probs = jax.nn.sigmoid(senti)
    return probs, senti, attn[:, :, None, :], pattn[:, None, :], fvec, pz, wv


if __name__ == "__main__":
    # small, module-consistent shapes
    vocab_size, embed_dim, hidden_dim, label_dim = 50, 32, 32, 1
    B, P, L = 2, 4, 8            # batch, max_page, max_len
    scale, page_scale = 10.0, 10.0

    key = jax.random.PRNGKey(0)
    k_emb, k_v, k_w, k_dec, k_ids, k_len, k_np = jax.random.split(key, 7)

    emb_table = jax.random.uniform(k_emb, (vocab_size, embed_dim),
                                   jnp.float32, -0.1, 0.1)
    V = jax.random.normal(k_v, (hidden_dim, 1), jnp.float32)
    W = jax.random.normal(k_w, (hidden_dim, 1), jnp.float32)
    dec_w = jax.random.normal(k_dec, (label_dim, hidden_dim), jnp.float32) * 0.1

    seq_ids = jax.random.randint(k_ids, (B, P, L), 0, vocab_size, jnp.int32)
    seq_lengths = jax.random.randint(k_len, (B, P), 1, L + 1, jnp.int32)
    num_pages = jax.random.randint(k_np, (B,), 1, P + 1, jnp.int32)

    outs = dual_attn_forward(emb_table, V, W, dec_w, seq_ids, num_pages,
                             seq_lengths, scale=scale, page_scale=page_scale)
    outs = jax.block_until_ready(outs)

    refs = reference_forward(emb_table, V, W, dec_w, seq_ids, num_pages,
                             seq_lengths, scale=scale, page_scale=page_scale)

    names = ["probs", "senti", "attn", "page_attn", "final_vec",
             "page_scores", "webpage_vec"]
    for name, o, r in zip(names, outs, refs):
        assert o.shape == r.shape, (name, o.shape, r.shape)
        assert jnp.allclose(o, r, atol=2e-4, rtol=2e-4), (
            name, float(jnp.max(jnp.abs(o - r))))

    print("KERNEL_OK")
</pallas_src>

<mosaic_0001>
module attributes {stable_mosaic.version = 11 : i64} {
  func.func @dual_attn_kernel(%arg0: i32, %arg1: memref<256x1xi32, #tpu.memory_space<vmem>>, %arg2: memref<8x4xi32, #tpu.memory_space<vmem>>, %arg3: memref<8x1xi32, #tpu.memory_space<vmem>>, %arg4: memref<50x32xbf16, #tpu.memory_space<vmem>>, %arg5: memref<50x32xbf16, #tpu.memory_space<vmem>>, %arg6: memref<1x32xf32, #tpu.memory_space<vmem>>, %arg7: memref<1x32xf32, #tpu.memory_space<vmem>>, %arg8: memref<8x4x8xf32, #tpu.memory_space<vmem>>, %arg9: memref<8x4x32xf32, #tpu.memory_space<vmem>>, %arg10: memref<8x40xf32, #tpu.memory_space<vmem>>) attributes {dimension_semantics = [#tpu.dimension_semantics<parallel>], iteration_bounds = array<i64: 1>, scalar_prefetch = 0 : i64, scratch_operands = 0 : i64, tpu.core_type = #tpu.core_type<tc>, window_params = [{transform_indices = @transform_0, window_bounds = array<i64: 256, 1>}, {transform_indices = @transform_1, window_bounds = array<i64: 8, 4>}, {transform_indices = @transform_2, window_bounds = array<i64: 8, 1>}, {pipeline_mode = #tpu.pipeline_mode<synchronous>, transform_indices = @transform_3, window_bounds = array<i64: 50, 32>}, {pipeline_mode = #tpu.pipeline_mode<synchronous>, transform_indices = @transform_4, window_bounds = array<i64: 50, 32>}, {pipeline_mode = #tpu.pipeline_mode<synchronous>, transform_indices = @transform_5, window_bounds = array<i64: 1, 32>}, {pipeline_mode = #tpu.pipeline_mode<synchronous>, transform_indices = @transform_6, window_bounds = array<i64: 1, 32>}, {transform_indices = @transform_7, window_bounds = array<i64: 8, 4, 8>}, {transform_indices = @transform_8, window_bounds = array<i64: 8, 4, 32>}, {transform_indices = @transform_9, window_bounds = array<i64: 8, 40>}]} {
    %c0 = arith.constant 0 : index
    %c0_0 = arith.constant 0 : index
    %0 = vector.load %arg1[%c0, %c0_0] : memref<256x1xi32, #tpu.memory_space<vmem>>, vector<256x1xi32>
    %1 = tpu.iota {dimensions = array<i32: 1>} : vector<256x50xi32>
    %2 = vector.broadcast %0 : vector<256x1xi32> to vector<256x50xi32>
    %3 = arith.cmpi eq, %2, %1 : vector<256x50xi32>
    %4 = arith.extui %3 : vector<256x50xi1> to vector<256x50xi32>
    %5 = arith.sitofp %4 : vector<256x50xi32> to vector<256x50xf32>
    %6 = arith.truncf %5 : vector<256x50xf32> to vector<256x50xbf16>
    %c0_1 = arith.constant 0 : index
    %c0_2 = arith.constant 0 : index
    %7 = vector.load %arg4[%c0_1, %c0_2] : memref<50x32xbf16, #tpu.memory_space<vmem>>, vector<50x32xbf16>
    %cst = arith.constant dense<0.000000e+00> : vector<256x32xf32>
    %8 = tpu.matmul %6, %7, %cst {dimension_numbers = #tpu.dot_dimension_numbers<[1], [0], [0], [1], [0, 0, 1, 1], [], []>} : vector<256x50xbf16>, vector<50x32xbf16>, vector<256x32xf32> -> vector<256x32xf32>
    %c0_3 = arith.constant 0 : index
    %c0_4 = arith.constant 0 : index
    %9 = vector.load %arg5[%c0_3, %c0_4] : memref<50x32xbf16, #tpu.memory_space<vmem>>, vector<50x32xbf16>
    %cst_5 = arith.constant dense<0.000000e+00> : vector<256x32xf32>
    %10 = tpu.matmul %6, %9, %cst_5 {dimension_numbers = #tpu.dot_dimension_numbers<[1], [0], [0], [1], [0, 0, 1, 1], [], []>} : vector<256x50xbf16>, vector<50x32xbf16>, vector<256x32xf32> -> vector<256x32xf32>
    %11 = arith.addf %8, %10 : vector<256x32xf32>
    %12 = vector.shape_cast %11 : vector<256x32xf32> to vector<8x4x8x32xf32>
    %c0_6 = arith.constant 0 : index
    %c0_7 = arith.constant 0 : index
    %13 = vector.load %arg6[%c0_6, %c0_7] : memref<1x32xf32, #tpu.memory_space<vmem>>, vector<1x32xf32>
    %14 = vector.shape_cast %13 : vector<1x32xf32> to vector<1x1x1x32xf32>
    %15 = vector.broadcast %14 : vector<1x1x1x32xf32> to vector<8x4x8x32xf32>
    %16 = arith.mulf %12, %15 : vector<8x4x8x32xf32>
    %cst_8 = arith.constant dense<0.000000e+00> : vector<8x4x8xf32>
    %17 = vector.multi_reduction <add>, %16, %cst_8 [3] : vector<8x4x8x32xf32> to vector<8x4x8xf32>
    %cst_9 = arith.constant 1.000000e-01 : f32
    %18 = vector.broadcast %cst_9 : f32 to vector<8x4x8xf32>
    %19 = arith.mulf %17, %18 : vector<8x4x8xf32>
    %c0_10 = arith.constant 0 : index
    %c0_11 = arith.constant 0 : index
    %20 = vector.load %arg2[%c0_10, %c0_11] : memref<8x4xi32, #tpu.memory_space<vmem>>, vector<8x4xi32>
    %c0_12 = arith.constant 0 : index
    %c0_13 = arith.constant 0 : index
    %21 = vector.load %arg3[%c0_12, %c0_13] : memref<8x1xi32, #tpu.memory_space<vmem>>, vector<8x1xi32>
    %22 = tpu.iota {dimensions = array<i32: 2>} : vector<8x4x8xi32>
    %23 = tpu.iota {dimensions = array<i32: 1>} : vector<8x4x8xi32>
    %24 = vector.shape_cast %21 : vector<8x1xi32> to vector<8x1x1xi32>
    %25 = vector.broadcast %24 : vector<8x1x1xi32> to vector<8x4x8xi32>
    %26 = arith.cmpi slt, %23, %25 : vector<8x4x8xi32>
    %27 = vector.shape_cast %20 : vector<8x4xi32> to vector<8x4x1xi32>
    %28 = vector.broadcast %27 : vector<8x4x1xi32> to vector<8x4x8xi32>
    %29 = arith.cmpi sge, %22, %28 : vector<8x4x8xi32>
    %30 = arith.andi %26, %29 : vector<8x4x8xi1>
    %cst_14 = arith.constant -9.990000e+02 : f32
    %31 = vector.broadcast %cst_14 : f32 to vector<8x4x8xf32>
    %32 = arith.select %30, %31, %19 : vector<8x4x8xi1>, vector<8x4x8xf32>
    %cst_15 = arith.constant dense<0xFF800000> : vector<8x4xf32>
    %33 = vector.multi_reduction <maximumf>, %32, %cst_15 [2] : vector<8x4x8xf32> to vector<8x4xf32>
    %34 = vector.shape_cast %33 : vector<8x4xf32> to vector<8x4x1xf32>
    %35 = vector.broadcast %34 : vector<8x4x1xf32> to vector<8x4x8xf32>
    %36 = arith.subf %32, %35 : vector<8x4x8xf32>
    %37 = math.exp %36 : vector<8x4x8xf32>
    %cst_16 = arith.constant dense<0.000000e+00> : vector<8x4xf32>
    %38 = vector.multi_reduction <add>, %37, %cst_16 [2] : vector<8x4x8xf32> to vector<8x4xf32>
    %39 = vector.shape_cast %38 : vector<8x4xf32> to vector<8x4x1xf32>
    %40 = tpu.reciprocal %39 {approx = true} : vector<8x4x1xf32> -> vector<8x4x1xf32>
    %41 = arith.mulf %39, %40 : vector<8x4x1xf32>
    %cst_17 = arith.constant 2.000000e+00 : f32
    %42 = vector.broadcast %cst_17 : f32 to vector<8x4x1xf32>
    %43 = arith.subf %42, %41 : vector<8x4x1xf32>
    %44 = arith.mulf %40, %43 : vector<8x4x1xf32>
    %45 = vector.broadcast %44 : vector<8x4x1xf32> to vector<8x4x8xf32>
    %46 = arith.mulf %37, %45 : vector<8x4x8xf32>
    %c0_18 = arith.constant 0 : index
    %c0_19 = arith.constant 0 : index
    %c0_20 = arith.constant 0 : index
    %47 = vector.load %arg8[%c0_18, %c0_19, %c0_20] : memref<8x4x8xf32, #tpu.memory_space<vmem>>, vector<8x4x8xf32>
    tpu.vector_store %arg8[%c0_18, %c0_19, %c0_20], %46 {strides = array<i32>} : memref<8x4x8xf32, #tpu.memory_space<vmem>>, vector<8x4x8xf32>,
    %48 = vector.shape_cast %46 : vector<8x4x8xf32> to vector<8x4x8x1xf32>
    %49 = vector.broadcast %48 : vector<8x4x8x1xf32> to vector<8x4x8x32xf32>
    %50 = arith.mulf %49, %12 : vector<8x4x8x32xf32>
    %cst_21 = arith.constant dense<0.000000e+00> : vector<8x4x32xf32>
    %51 = vector.multi_reduction <add>, %50, %cst_21 [2] : vector<8x4x8x32xf32> to vector<8x4x32xf32>
    %c0_22 = arith.constant 0 : index
    %c0_23 = arith.constant 0 : index
    %c0_24 = arith.constant 0 : index
    %52 = vector.load %arg9[%c0_22, %c0_23, %c0_24] : memref<8x4x32xf32, #tpu.memory_space<vmem>>, vector<8x4x32xf32>
    tpu.vector_store %arg9[%c0_22, %c0_23, %c0_24], %51 {strides = array<i32>} : memref<8x4x32xf32, #tpu.memory_space<vmem>>, vector<8x4x32xf32>,
    %c0_25 = arith.constant 0 : index
    %c0_26 = arith.constant 0 : index
    %53 = vector.load %arg7[%c0_25, %c0_26] : memref<1x32xf32, #tpu.memory_space<vmem>>, vector<1x32xf32>
    %54 = vector.shape_cast %53 : vector<1x32xf32> to vector<1x1x32xf32>
    %55 = vector.broadcast %54 : vector<1x1x32xf32> to vector<8x4x32xf32>
    %56 = arith.mulf %51, %55 : vector<8x4x32xf32>
    %cst_27 = arith.constant dense<0.000000e+00> : vector<8x4xf32>
    %57 = vector.multi_reduction <add>, %56, %cst_27 [2] : vector<8x4x32xf32> to vector<8x4xf32>
    %cst_28 = arith.constant 1.000000e-01 : f32
    %58 = vector.broadcast %cst_28 : f32 to vector<8x4xf32>
    %59 = arith.mulf %57, %58 : vector<8x4xf32>
    %60 = tpu.iota {dimensions = array<i32: 1>} : vector<8x4xi32>
    %61 = vector.broadcast %21 : vector<8x1xi32> to vector<8x4xi32>
    %62 = arith.cmpi sge, %60, %61 : vector<8x4xi32>
    %cst_29 = arith.constant -9.999000e+03 : f32
    %63 = vector.broadcast %cst_29 : f32 to vector<8x4xf32>
    %64 = arith.select %62, %63, %59 : vector<8x4xi1>, vector<8x4xf32>
    %65 = vector.shape_cast %64 : vector<8x4xf32> to vector<8x4x1xf32>
    %66 = vector.shape_cast %64 : vector<8x4xf32> to vector<8x1x4xf32>
    %67 = vector.broadcast %66 : vector<8x1x4xf32> to vector<8x4x4xf32>
    %68 = vector.broadcast %65 : vector<8x4x1xf32> to vector<8x4x4xf32>
    %69 = arith.cmpf oge, %67, %68 : vector<8x4x4xf32>
    %70 = arith.extui %69 : vector<8x4x4xi1> to vector<8x4x4xi32>
    %71 = arith.sitofp %70 : vector<8x4x4xi32> to vector<8x4x4xf32>
    %cst_30 = arith.constant dense<0.000000e+00> : vector<8x4xf32>
    %72 = vector.multi_reduction <add>, %71, %cst_30 [2] : vector<8x4x4xf32> to vector<8x4xf32>
    %73 = vector.broadcast %66 : vector<8x1x4xf32> to vector<8x4x4xf32>
    %74 = arith.mulf %71, %73 : vector<8x4x4xf32>
    %cst_31 = arith.constant dense<0.000000e+00> : vector<8x4xf32>
    %75 = vector.multi_reduction <add>, %74, %cst_31 [2] : vector<8x4x4xf32> to vector<8x4xf32>
    %76 = arith.mulf %72, %64 : vector<8x4xf32>
    %cst_32 = arith.constant 1.000000e+00 : f32
    %77 = vector.broadcast %cst_32 : f32 to vector<8x4xf32>
    %78 = arith.addf %77, %76 : vector<8x4xf32>
    %79 = arith.cmpf ogt, %78, %75 : vector<8x4xf32>
    %80 = arith.extui %79 : vector<8x4xi1> to vector<8x4xi32>
    %81 = arith.sitofp %80 : vector<8x4xi32> to vector<8x4xf32>
    %cst_33 = arith.constant dense<0.000000e+00> : vector<8xf32>
    %82 = vector.multi_reduction <add>, %81, %cst_33 [1] : vector<8x4xf32> to vector<8xf32>
    %83 = vector.shape_cast %82 : vector<8xf32> to vector<8x1xf32>
    %84 = arith.mulf %81, %64 : vector<8x4xf32>
    %cst_34 = arith.constant dense<0.000000e+00> : vector<8xf32>
    %85 = vector.multi_reduction <add>, %84, %cst_34 [1] : vector<8x4xf32> to vector<8xf32>
    %86 = vector.shape_cast %85 : vector<8xf32> to vector<8x1xf32>
    %cst_35 = arith.constant 1.000000e+00 : f32
    %87 = vector.broadcast %cst_35 : f32 to vector<8x1xf32>
    %88 = arith.subf %86, %87 : vector<8x1xf32>
    %89 = arith.divf %88, %83 : vector<8x1xf32>
    %90 = vector.broadcast %89 : vector<8x1xf32> to vector<8x4xf32>
    %91 = arith.subf %64, %90 : vector<8x4xf32>
    %cst_36 = arith.constant 0.000000e+00 : f32
    %92 = vector.broadcast %cst_36 : f32 to vector<8x4xf32>
    %93 = arith.maximumf %91, %92 : vector<8x4xf32>
    %94 = vector.shape_cast %93 : vector<8x4xf32> to vector<8x4x1xf32>
    %95 = vector.broadcast %94 : vector<8x4x1xf32> to vector<8x4x32xf32>
    %96 = arith.mulf %95, %51 : vector<8x4x32xf32>
    %cst_37 = arith.constant dense<0.000000e+00> : vector<8x32xf32>
    %97 = vector.multi_reduction <add>, %96, %cst_37 [1] : vector<8x4x32xf32> to vector<8x32xf32>
    %c0_38 = arith.constant 0 : index
    %c0_39 = arith.constant 0 : index
    %98 = vector.load %arg10[%c0_38, %c0_39] : memref<8x40xf32, #tpu.memory_space<vmem>>, vector<8x32xf32>
    tpu.vector_store %arg10[%c0_38, %c0_39], %97 {strides = array<i32>} : memref<8x40xf32, #tpu.memory_space<vmem>>, vector<8x32xf32>,
    %c0_40 = arith.constant 0 : index
    %c32 = arith.constant 32 : index
    %99 = vector.load %arg10[%c0_40, %c32] : memref<8x40xf32, #tpu.memory_space<vmem>>, vector<8x4xf32>
    tpu.vector_store %arg10[%c0_40, %c32], %93 {strides = array<i32>} : memref<8x40xf32, #tpu.memory_space<vmem>>, vector<8x4xf32>,
    %c0_41 = arith.constant 0 : index
    %c36 = arith.constant 36 : index
    %100 = vector.load %arg10[%c0_41, %c36] : memref<8x40xf32, #tpu.memory_space<vmem>>, vector<8x4xf32>
    tpu.vector_store %arg10[%c0_41, %c36], %64 {strides = array<i32>} : memref<8x40xf32, #tpu.memory_space<vmem>>, vector<8x4xf32>,
    return
  }
  func.func @transform_0(%arg0: i32) -> (i32, i32) {
    %c0_i32 = arith.constant 0 : i32
    %c0_i32_0 = arith.constant 0 : i32
    return %arg0, %c0_i32 : i32, i32
  }
  func.func @transform_1(%arg0: i32) -> (i32, i32) {
    %c0_i32 = arith.constant 0 : i32
    %c0_i32_0 = arith.constant 0 : i32
    return %arg0, %c0_i32 : i32, i32
  }
  func.func @transform_2(%arg0: i32) -> (i32, i32) {
    %c0_i32 = arith.constant 0 : i32
    %c0_i32_0 = arith.constant 0 : i32
    return %arg0, %c0_i32 : i32, i32
  }
  func.func @transform_3(%arg0: i32) -> (i32, i32) {
    %c0_i32 = arith.constant 0 : i32
    %c0_i32_0 = arith.constant 0 : i32
    %c0_i32_1 = arith.constant 0 : i32
    return %c0_i32, %c0_i32_0 : i32, i32
  }
  func.func @transform_4(%arg0: i32) -> (i32, i32) {
    %c0_i32 = arith.constant 0 : i32
    %c0_i32_0 = arith.constant 0 : i32
    %c0_i32_1 = arith.constant 0 : i32
    return %c0_i32, %c0_i32_0 : i32, i32
  }
  func.func @transform_5(%arg0: i32) -> (i32, i32) {
    %c0_i32 = arith.constant 0 : i32
    %c0_i32_0 = arith.constant 0 : i32
    %c0_i32_1 = arith.constant 0 : i32
    return %c0_i32, %c0_i32_0 : i32, i32
  }
  func.func @transform_6(%arg0: i32) -> (i32, i32) {
    %c0_i32 = arith.constant 0 : i32
    %c0_i32_0 = arith.constant 0 : i32
    %c0_i32_1 = arith.constant 0 : i32
    return %c0_i32, %c0_i32_0 : i32, i32
  }
  func.func @transform_7(%arg0: i32) -> (i32, i32, i32) {
    %c0_i32 = arith.constant 0 : i32
    %c0_i32_0 = arith.constant 0 : i32
    %c0_i32_1 = arith.constant 0 : i32
    return %arg0, %c0_i32, %c0_i32_0 : i32, i32, i32
  }
  func.func @transform_8(%arg0: i32) -> (i32, i32, i32) {
    %c0_i32 = arith.constant 0 : i32
    %c0_i32_0 = arith.constant 0 : i32
    %c0_i32_1 = arith.constant 0 : i32
    return %arg0, %c0_i32, %c0_i32_0 : i32, i32, i32
  }
  func.func @transform_9(%arg0: i32) -> (i32, i32) {
    %c0_i32 = arith.constant 0 : i32
    %c0_i32_0 = arith.constant 0 : i32
    return %arg0, %c0_i32 : i32, i32
  }
}

</mosaic_0001>

<bundles_post_ra>
// kernel: tpu_custom_call.1
= control target key start
LH: loop header
LB: loop body
LE: loop exit
PB: predicated region body
PF: predicated region fallthrough
CT: control target
= control target key end

     0   :  { %15 = vsyncpa [#allocation3], 0  ;;  %v3199_v2 = vmov 0   ;;  %vm358_vm0 = vcmask 1040384   ;;  %s4443_s0 = inlined_call_operand.vmem [shape: s32[256,1], index: 0, kind: input, shape index: {}]   ;;  %s4444_s1 = inlined_call_operand.vmem [shape: s32[8,4], index: 1, kind: input, shape index: {}]   ;;  %s4445_s2 = inlined_call_operand.vmem [shape: s32[8,1], index: 2, kind: input, shape index: {}]   ;;  %s4446_s3 = inlined_call_operand.vmem [shape: bf16[50,32], index: 3, kind: input, shape index: {}]   ;;  %s4447_s4 = inlined_call_operand.vmem [shape: bf16[50,32], index: 4, kind: input, shape index: {}]   ;;  %s4448_s5 = inlined_call_operand.vmem [shape: f32[1,32], index: 5, kind: input, shape index: {}]   ;;  %s4449_s6 = inlined_call_operand.vmem [shape: f32[1,32], index: 6, kind: input, shape index: {}]   ;;  %s4450_s7 = inlined_call_operand.hbm [shape: f32[8,4,8], index: 7, kind: output, shape index: {0}]   ;;  %s4451_s8 = inlined_call_operand.hbm [shape: f32[8,4,32], index: 8, kind: output, shape index: {1}]   ;;  %s4452_s9 = inlined_call_operand.hbm [shape: f32[8,40], index: 9, kind: output, shape index: {2}]  }
   0x1   :  { %v34_v0 = vld [vmem:[%s4443_s0 + $0x10] sm:$0xff]  ;;  %v32_v1 = vld [vmem:[%s4443_s0] sm:$0xff]  ;;  %3070 = vset.pattern.permute.xlu1 %v3199_v2  ;;  %3069 = vset.pattern.permute.xlu0 %v3199_v2  ;;  %v35_v3 = vld [vmem:[%s4443_s0 + $0x18] sm:$0xff] }
   0x2   :  { %73 = vperm.xlu1 %3070, %v34_v0   ;;  %67 = vperm.xlu0 %3069, %v32_v1   ;;  %v33_v4 = vld [vmem:[%s4443_s0 + $0x8] sm:$0xff]  ;;  %v36_v6 = vld [vmem:[%s4443_s0 + $0x20] sm:$0xff]  ;;  %v39_v7 = vld [vmem:[%s4443_s0 + $0x38] sm:$0xff] }
   0x3   :  { %v37_v5 = vld [vmem:[%s4443_s0 + $0x28] sm:$0xff]  ;;  %v38_v8 = vld [vmem:[%s4443_s0 + $0x30] sm:$0xff]  ;;  %v3092_v9 = vld [vmem:[%s4447_s4 + $0x18] ss:$0 sps:$4 sm:$0x11]  }
   0x4   :  { %v3093_v10 = vld [vmem:[%s4446_s3 + $0x18] ss:$0 sps:$4 sm:$0x11]   ;;  %v3094_v11 = vld [vmem:[%s4447_s4 + $0x10] sm:$0xff]   ;;  %v41_v12 = vld [vmem:[%s4443_s0 + $0x48] sm:$0xff]  ;;  %3057 = vmatprep.subr.msk.bf16.mxu0 %vm358_vm0, %v3092_v9  ;;  %v360_v14 = vsel %vm358_vm0, %v3092_v9, 0 }
   0x5   :  { %v40_v13 = vld [vmem:[%s4443_s0 + $0x40] sm:$0xff]  ;;  %v545_v15 = vsel %vm358_vm0, %v3093_v10, 0  ;;  %v3095_v16 = vld [vmem:[%s4446_s3 + $0x10] sm:$0xff]   ;;  %3058 = vmatprep.subr.msk.bf16.mxu1 %vm358_vm0, %v3093_v10  ;;  %2978 = vmatpush3.bf16.msra.mxu0 %v360_v14  ;;  %v3096_v17 = vld [vmem:[%s4447_s4 + $0x8] sm:$0xff]  }
   0x6   :  { %76 = vperm.xlu1 %3070, %v35_v3   ;;  %70 = vperm.xlu0 %3069, %v33_v4   ;;  %v3097_v18 = vld [vmem:[%s4446_s3 + $0x8] sm:$0xff]  }
   0x7   :  { %3018 = vmatpush3.bf16.msra.mxu1 %v545_v15  ;;  %2979 = vmatprep.subr.bf16.mxu0 %v3094_v11 }
   0xa   :  { %82 = vperm.xlu1 %3070, %v37_v5   ;;  %79 = vperm.xlu0 %3069, %v36_v6  }
   0xe   :  { %88 = vperm.xlu1 %3070, %v39_v7   ;;  %85 = vperm.xlu0 %3069, %v38_v8  }
  0x12   :  { %94 = vperm.xlu1 %3070, %v41_v12   ;;  %91 = vperm.xlu0 %3069, %v40_v13  }
  0x13   :  { %16 = vsyncpa [#allocation5], 0  ;;  %v43_v19 = vld [vmem:[%s4443_s0 + $0x58] sm:$0xff]  ;;  %v42_v20 = vld [vmem:[%s4443_s0 + $0x50] sm:$0xff]  ;;  %3019 = vmatprep.subr.bf16.mxu1 %v3095_v16  ;;  %2980 = vmatpush3.bf16.msra.mxu0 %v3094_v11  ;;  %v64_v31 = vlaneseq  ;;  %v3200_v32 = vmov 1966171168  }
  0x14   :  { %3020 = vmatpush3.bf16.msra.mxu1 %v3095_v16  ;;  %2981 = vmatprep.subr.bf16.mxu0 %v3096_v17  ;;  %v3098_v21 = vld [vmem:[%s4447_s4] sm:$0xff]   ;;  %v45_v23 = vld [vmem:[%s4443_s0 + $0x68] sm:$0xff]  ;;  %v47_v25 = vld [vmem:[%s4443_s0 + $0x78] sm:$0xff]  ;;  %v882_v33 = vunpack.c.l.s4 %v3200_v32  ;;  %vm309_vm5 = vcmask 408576   ;;  %s3203_s28 = smov 36   ;;  %s3204_s29 = smov [#allocation4]  }
  0x15   :  { %3021 = vmatprep.subr.bf16.mxu1 %v3097_v18  ;;  %v3099_v22 = vld [vmem:[%s4446_s3] sm:$0xff]   ;;  %v46_v26 = vld [vmem:[%s4443_s0 + $0x70] sm:$0xff]  ;;  %v49_v27 = vld [vmem:[%s4443_s0 + $0x88] sm:$0xff]  ;;  %v3350_v36 = vshrl.u32 %v64_v31, 7  ;;  %s2818_s30 = sshll.u32 %s3204_s29, 4  ;;  %s3205_s10 = smov [#allocation2]   ;;  %s2819_s30 = int_to_ptr.vmem [resolvable:$true] %s2818_s30 }
  0x16   :  { %100 = vperm.xlu1 %3070, %v43_v19   ;;  %97 = vperm.xlu0 %3069, %v42_v20   ;;  %v44_v24 = vld [vmem:[%s4443_s0 + $0x60] sm:$0xff]  ;;  %v51_v29 = vld [vmem:[%s4443_s0 + $0x98] sm:$0xff]  ;;  %v50_v30 = vld [vmem:[%s4443_s0 + $0x90] sm:$0xff]  ;;  %v883_v37 = vunpack.c.0.s8 %v882_v33  ;;  %v3438_v20 = vand.u32 127, %v64_v31  ;;  %s2806_s4 = sshll.u32 %s3205_s10, 4  ;;  %s3135_s11 = scalar_lea.vmem %s2819_s30, 512  ;;  %s2807_s4 = int_to_ptr.vmem [resolvable:$true] %s2806_s4 }
  0x17   :  { %2982 = vmatpush3.bf16.msra.mxu0 %v3096_v17  ;;  %v48_v28 = vld [vmem:[%s4443_s0 + $0x80] sm:$0xff]  ;;  %v53_v34 = vld [vmem:[%s4443_s0 + $0xa8] sm:$0xff]  ;;  %v55_v38 = vld [vmem:[%s4443_s0 + $0xb8] sm:$0xff]  ;;  %v3385_v52 = vsub.s32 0, %v3350_v36  ;;  %v3404_v5 = vsub.s32 1, %v3350_v36  ;;  %v3415_v9 = vsub.s32 2, %v3350_v36  ;;  %p3136_p0 = scmp.ne.s32.totalorder %s2819_s30, %s3135_s11  ;;  %p3140_p1 = scmp.lt.s32.totalorder %s2819_s30, %s2819_s30 }
  0x18   :  { %3022 = vmatpush3.bf16.msra.mxu1 %v3097_v18  ;;  %2983 = vmatprep.subr.bf16.mxu0 %v3098_v21  ;;  %v52_v35 = vld [vmem:[%s4443_s0 + $0xa0] sm:$0xff]  ;;  %v54_v39 = vld [vmem:[%s4443_s0 + $0xb0] sm:$0xff]  ;;  %v3359_v40 = vsub.s32 %v883_v37, %v3350_v36  ;;  %v57_v41 = vld [vmem:[%s4443_s0 + $0xc8] sm:$0xff]  ;;  %v3422_v13 = vsub.s32 4, %v3350_v36  ;;  %v3428_v16 = vsub.s32 3, %v3350_v36  ;;  %v3433_v18 = vsub.s32 5, %v3350_v36  ;;  %p3141_p2 = scmp.lt.s32.totalorder %s3135_s11, %s3135_s11 }
  0x19   :  { %3023 = vmatprep.subr.bf16.mxu1 %v3099_v22  ;;  %v56_v42 = vld [vmem:[%s4443_s0 + $0xc0] sm:$0xff]  ;;  %v59_v45 = vld [vmem:[%s4443_s0 + $0xd8] sm:$0xff]  ;;  %v58_v46 = vld [vmem:[%s4443_s0 + $0xd0] sm:$0xff] }
  0x1a   :  { %106 = vperm.xlu1 %3070, %v45_v23   ;;  %103 = vperm.xlu0 %3069, %v44_v24   ;;  %4471 = vst [vmem:[#allocation9_spill] sm:$0xff] %v3359_v40  ;;  %v877_v43 = vld [vmem:[%s4445_s2] sm:$0xff]  ;;  %v61_v49 = vld [vmem:[%s4443_s0 + $0xe8] sm:$0xff]  ;;  %v63_v55 = vld [vmem:[%s4443_s0 + $0xf8] sm:$0xff]  ;;  %p3142_p3 = por %p3141_p2, %p3140_p1 }
  0x1b   :  { %2984 = vmatpush3.bf16.msra.mxu0 %v3098_v21  ;;  %v887_v44 = vrot.slane %v877_v43, %v3359_v40  ;;  %v880_v48 = vcombine.high %v877_v43, %v877_v43  ;;  %v60_v50 = vld [vmem:[%s4443_s0 + $0xe0] sm:$0xff]  ;;  %v62_v56 = vld [vmem:[%s4443_s0 + $0xf0] sm:$0xff]  ;;  %4472 = vst [vmem:[#allocation10_spill] sm:$0xff] %v3422_v13  ;;  %4473 = vst [vmem:[#allocation11_spill] sm:$0xff] %v3433_v18 }
  0x1c   :  { %3024 = vmatpush3.bf16.msra.mxu1 %v3099_v22  ;;  %v3409_v6 = vld [vmem:[%s4444_s1] sm:$0xff]  ;;  %p3143_p4 = pnand %p3142_p3, %p3136_p0 }
  0x1d   :  { %v895_v47 = vcombine.high %v887_v44, %v887_v44  ;;  %v903_v51 = vrot.slane %v887_v44, %v3359_v40  ;;  %v894_v54 = vrot.slane %v880_v48, %v3359_v40  ;;  %v1003_v8 = vrot.slane %v3409_v6, %v3404_v5 }
  0x1e   :  { %112 = vperm.xlu1 %3070, %v47_v25   ;;  %109 = vperm.xlu0 %3069, %v46_v26   ;;  %v996_v10 = vrot.slane %v3409_v6, %v3385_v52  ;;  %v1010_v12 = vrot.slane %v3409_v6, %v3415_v9  ;;  %v1024_v15 = vrot.slane %v3409_v6, %v3422_v13  ;;  %v4453_v25 = vmov 0.0  }
  0x1f   :  { %v917_v53 = vrot.slane %v895_v47, %v3359_v40  ;;  %v925_v57 = vcombine.high %v903_v51, %v903_v51  ;;  %v932_v58 = vrot.slane %v903_v51, %v3385_v52  ;;  %v910_v60 = vrot.slane %v894_v54, %v3359_v40 }
  0x20   :  { %v896_v62 = vcombine.high %v894_v54, %v894_v54  ;;  %v1017_v17 = vrot.slane %v3409_v6, %v3428_v16  ;;  %v1031_v19 = vrot.slane %v3409_v6, %v3433_v18 }
  0x21   :  { %v936_v59 = vrot.slane %v917_v53, %v3385_v52  ;;  %v940_v61 = vrot.slane %v925_v57, %v3385_v52  ;;  %v948_v63 = vrot.slane %v910_v60, %v3385_v52  ;;  %v927_v0 = vcombine.high %v917_v53, %v917_v53 }
  0x22   :  { %118 = vperm.xlu1 %3070, %v49_v27   ;;  %115 = vperm.xlu0 %3069, %v48_v28   ;;  %v926_v1 = vcombine.high %v910_v60, %v910_v60  ;;  %v924_v4 = vrot.slane %v896_v62, %v3359_v40 }
  0x23   :  { %v944_v2 = vrot.slane %v927_v0, %v3385_v52 }
  0x24   :  { %v956_v3 = vrot.slane %v926_v1, %v3385_v52  ;;  %v952_v7 = vrot.slane %v924_v4, %v3385_v52  ;;  %v928_v11 = vcombine.high %v924_v4, %v924_v4 }
  0x26   :  { %124 = vperm.xlu1 %3070, %v51_v29   ;;  %121 = vperm.xlu0 %3069, %v50_v30   ;;  %v960_v14 = vrot.slane %v928_v11, %v3385_v52 }
  0x2a   :  { %130 = vperm.xlu1 %3070, %v53_v34   ;;  %127 = vperm.xlu0 %3069, %v52_v35  }
  0x2e   :  { %136 = vperm.xlu1 %3070, %v55_v38   ;;  %133 = vperm.xlu0 %3069, %v54_v39  }
  0x32   :  { %142 = vperm.xlu1 %3070, %v57_v41   ;;  %139 = vperm.xlu0 %3069, %v56_v42  }
  0x36   :  { %148 = vperm.xlu1 %3070, %v59_v45   ;;  %145 = vperm.xlu0 %3069, %v58_v46  }
  0x3a   :  { %154 = vperm.xlu1 %3070, %v61_v49   ;;  %151 = vperm.xlu0 %3069, %v60_v50  }
  0x3e   :  { %160 = vperm.xlu1 %3070, %v63_v55   ;;  %157 = vperm.xlu0 %3069, %v62_v56  }
  0x42   :  { %962 = vperm.xlu1 %3070, %v932_v58   ;;  %965 = vperm.xlu0 %3069, %v936_v59  }
  0x46   :  { %968 = vperm.xlu1 %3070, %v940_v61   ;;  %974 = vperm.xlu0 %3069, %v948_v63  }
  0x4a   :  { %971 = vperm.xlu1 %3070, %v944_v2   ;;  %980 = vperm.xlu0 %3069, %v956_v3  }
  0x4e   :  { %977 = vperm.xlu1 %3070, %v952_v7   ;;  %1005 = vbcast.lane.b32.xlu0 %v1003_v8, 256 }
  0x52   :  { %998 = vbcast.lane.b32.xlu1 %v996_v10, 256  ;;  %1012 = vbcast.lane.b32.xlu0 %v1010_v12, 256 }
  0x56   :  { %983 = vperm.xlu1 %3070, %v960_v14   ;;  %1026 = vbcast.lane.b32.xlu0 %v1024_v15, 256 }
  0x5a   :  { %1019 = vbcast.lane.b32.xlu1 %v1017_v17, 256 }
  0x5e   :  { %1033 = vbcast.lane.b32.xlu1 %v1031_v19, 256 }
  0x7d   :  { %v74_v21 = vpop.permute.xlu1 %73  ;;  %v68_v22 = vpop.permute.xlu0 %67 }
  0x7e   :  { %vm164_vm1 = vcmp.eq.s32.totalorder %v74_v21, %v3438_v20  ;;  %vm162_vm2 = vcmp.eq.s32.totalorder %v68_v22, %v3438_v20 }
  0x7f   :  { %v2848_v26 = vsel %vm164_vm1, 1.0, %v4453_v25  ;;  %v2846_v28 = vsel %vm162_vm2, 1.0, %v4453_v25 }
  0x81   :  { %v77_v23 = vpop.permute.xlu1 %76  ;;  %v71_v24 = vpop.permute.xlu0 %70 }
  0x82   :  { %vm165_vm3 = vcmp.eq.s32.totalorder %v77_v23, %v3438_v20  ;;  %vm163_vm4 = vcmp.eq.s32.totalorder %v71_v24, %v3438_v20 }
  0x83   :  { %v2849_v27 = vsel %vm165_vm3, 1.0, %v4453_v25  ;;  %v2847_v29 = vsel %vm163_vm4, 1.0, %v4453_v25 }
  0x84   :  { %v259_v30 = vpack.c.bf16 %v2849_v27, %v2848_v26  ;;  %v258_v31 = vpack.c.bf16 %v2847_v29, %v2846_v28 }
  0x85   :  { %v83_v32 = vpop.permute.xlu1 %82  ;;  %v80_v33 = vpop.permute.xlu0 %79 }
  0x86   :  { %vm167_vm6 = vcmp.eq.s32.totalorder %v83_v32, %v3438_v20  ;;  %vm166_vm7 = vcmp.eq.s32.totalorder %v80_v33, %v3438_v20  ;;  %2985 = vmatprep.mubr.msk.bf16.mxu0 %vm309_vm5, %v258_v31  ;;  %3025 = vmatprep.mubr.msk.bf16.mxu1 %vm309_vm5, %v258_v31 }
  0x87   :  { %v2851_v34 = vsel %vm167_vm6, 1.0, %v4453_v25  ;;  %v2850_v35 = vsel %vm166_vm7, 1.0, %v4453_v25  ;;  %2986 = vmatmul.mubr.msk.bf16.vlgmr.msra.gmra.mxu0 %vm309_vm5, %v259_v30  ;;  %3026 = vmatmul.mubr.msk.bf16.vlgmr.msra.gmra.mxu1 %vm309_vm5, %v259_v30 }
  0x88   :  { %v260_v37 = vpack.c.bf16 %v2851_v34, %v2850_v35 }
  0x89   :  { %v89_v38 = vpop.permute.xlu1 %88  ;;  %v86_v39 = vpop.permute.xlu0 %85 }
  0x8a   :  { %vm169_vm8 = vcmp.eq.s32.totalorder %v89_v38, %v3438_v20  ;;  %vm168_vm9 = vcmp.eq.s32.totalorder %v86_v39, %v3438_v20  ;;  %2989 = vmatprep.mubr.msk.bf16.mxu0 %vm309_vm5, %v260_v37  ;;  %3029 = vmatprep.mubr.msk.bf16.mxu1 %vm309_vm5, %v260_v37 }
  0x8b   :  { %v2853_v41 = vsel %vm169_vm8, 1.0, %v4453_v25  ;;  %v2852_v42 = vsel %vm168_vm9, 1.0, %v4453_v25 }
  0x8c   :  { %v261_v43 = vpack.c.bf16 %v2853_v41, %v2852_v42 }
  0x8d   :  { %v95_v44 = vpop.permute.xlu1 %94  ;;  %v92_v45 = vpop.permute.xlu0 %91 }
  0x8e   :  { %vm171_vm10 = vcmp.eq.s32.totalorder %v95_v44, %v3438_v20  ;;  %vm170_vm11 = vcmp.eq.s32.totalorder %v92_v45, %v3438_v20 }
  0x8f   :  { %v2855_v46 = vsel %vm171_vm10, 1.0, %v4453_v25  ;;  %v2854_v47 = vsel %vm170_vm11, 1.0, %v4453_v25  ;;  %2990 = vmatmul.mubr.msk.bf16.gmra.mxu0 %vm309_vm5, %v261_v43  ;;  %3030 = vmatmul.mubr.msk.bf16.gmra.mxu1 %vm309_vm5, %v261_v43 }
  0x90   :  { %v262_v48 = vpack.c.bf16 %v2855_v46, %v2854_v47 }
  0x91   :  { %v101_v49 = vpop.permute.xlu1 %100  ;;  %v98_v50 = vpop.permute.xlu0 %97 }
  0x92   :  { %vm173_vm12 = vcmp.eq.s32.totalorder %v101_v49, %v3438_v20  ;;  %vm172_vm13 = vcmp.eq.s32.totalorder %v98_v50, %v3438_v20  ;;  %2993 = vmatprep.mubr.msk.bf16.mxu0 %vm309_vm5, %v262_v48  ;;  %3033 = vmatprep.mubr.msk.bf16.mxu1 %vm309_vm5, %v262_v48 }
  0x93   :  { %v2857_v51 = vsel %vm173_vm12, 1.0, %v4453_v25  ;;  %v2856_v53 = vsel %vm172_vm13, 1.0, %v4453_v25 }
  0x94   :  { %v263_v54 = vpack.c.bf16 %v2857_v51, %v2856_v53 }
  0x95   :  { %v107_v55 = vpop.permute.xlu1 %106  ;;  %v104_v56 = vpop.permute.xlu0 %103 }
  0x96   :  { %vm175_vm14 = vcmp.eq.s32.totalorder %v107_v55, %v3438_v20  ;;  %vm174_vm15 = vcmp.eq.s32.totalorder %v104_v56, %v3438_v20 }
  0x97   :  { %v2859_v57 = vsel %vm175_vm14, 1.0, %v4453_v25  ;;  %v2858_v58 = vsel %vm174_vm15, 1.0, %v4453_v25  ;;  %2994 = vmatmul.mubr.msk.bf16.gmra.mxu0 %vm309_vm5, %v263_v54  ;;  %3034 = vmatmul.mubr.msk.bf16.gmra.mxu1 %vm309_vm5, %v263_v54  ;;  %v3539_v54 = vld [vmem:[%s4448_s5] ss:$0 sm:$0xff] }
  0x98   :  { %v264_v59 = vpack.c.bf16 %v2859_v57, %v2858_v58 }
  0x99   :  { %v113_v60 = vpop.permute.xlu1 %112  ;;  %v110_v61 = vpop.permute.xlu0 %109 }
  0x9a   :  { %vm177_vm0 = vcmp.eq.s32.totalorder %v113_v60, %v3438_v20  ;;  %vm176_vm1 = vcmp.eq.s32.totalorder %v110_v61, %v3438_v20  ;;  %2997 = vmatprep.mubr.msk.bf16.mxu0 %vm309_vm5, %v264_v59  ;;  %3037 = vmatprep.mubr.msk.bf16.mxu1 %vm309_vm5, %v264_v59 }
  0x9b   :  { %v2861_v62 = vsel %vm177_vm0, 1.0, %v4453_v25  ;;  %v2860_v63 = vsel %vm176_vm1, 1.0, %v4453_v25 }
  0x9c   :  { %v265_v0 = vpack.c.bf16 %v2861_v62, %v2860_v63 }
  0x9d   :  { %v119_v1 = vpop.permute.xlu1 %118  ;;  %v116_v2 = vpop.permute.xlu0 %115 }
  0x9e   :  { %vm179_vm2 = vcmp.eq.s32.totalorder %v119_v1, %v3438_v20  ;;  %vm178_vm3 = vcmp.eq.s32.totalorder %v116_v2, %v3438_v20 }
  0x9f   :  { %v2863_v3 = vsel %vm179_vm2, 1.0, %v4453_v25  ;;  %v2862_v4 = vsel %vm178_vm3, 1.0, %v4453_v25  ;;  %2998 = vmatmul.mubr.msk.bf16.gmra.mxu0 %vm309_vm5, %v265_v0  ;;  %3038 = vmatmul.mubr.msk.bf16.gmra.mxu1 %vm309_vm5, %v265_v0  ;;  %vm747_vm3 = vcmask 261120  }
  0xa0   :  { %v266_v7 = vpack.c.bf16 %v2863_v3, %v2862_v4 }
  0xa1   :  { %v125_v8 = vpop.permute.xlu1 %124  ;;  %v122_v10 = vpop.permute.xlu0 %121 }
  0xa2   :  { %vm181_vm4 = vcmp.eq.s32.totalorder %v125_v8, %v3438_v20  ;;  %vm180_vm6 = vcmp.eq.s32.totalorder %v122_v10, %v3438_v20  ;;  %3001 = vmatprep.mubr.msk.bf16.mxu0 %vm309_vm5, %v266_v7  ;;  %3041 = vmatprep.mubr.msk.bf16.mxu1 %vm309_vm5, %v266_v7 }
  0xa3   :  { %v2865_v11 = vsel %vm181_vm4, 1.0, %v4453_v25  ;;  %v2864_v12 = vsel %vm180_vm6, 1.0, %v4453_v25  ;;  %vm1227_vm4 = vcmask 1042434  }
  0xa4   :  { %v267_v14 = vpack.c.bf16 %v2865_v11, %v2864_v12 }
  0xa5   :  { %v131_v15 = vpop.permute.xlu1 %130  ;;  %v128_v17 = vpop.permute.xlu0 %127 }
  0xa6   :  { %vm183_vm7 = vcmp.eq.s32.totalorder %v131_v15, %v3438_v20  ;;  %vm182_vm8 = vcmp.eq.s32.totalorder %v128_v17, %v3438_v20 }
  0xa7   :  { %v2867_v19 = vsel %vm183_vm7, 1.0, %v4453_v25  ;;  %v2866_v21 = vsel %vm182_vm8, 1.0, %v4453_v25  ;;  %3002 = vmatmul.mubr.msk.bf16.gmra.mxu0 %vm309_vm5, %v267_v14  ;;  %3042 = vmatmul.mubr.msk.bf16.gmra.mxu1 %vm309_vm5, %v267_v14  ;;  %vm1229_vm7 = vcmask 1043459  }
  0xa8   :  { %v268_v22 = vpack.c.bf16 %v2867_v19, %v2866_v21 }
  0xa9   :  { %v137_v23 = vpop.permute.xlu1 %136  ;;  %v134_v24 = vpop.permute.xlu0 %133 }
  0xaa   :  { %vm185_vm9 = vcmp.eq.s32.totalorder %v137_v23, %v3438_v20  ;;  %vm184_vm10 = vcmp.eq.s32.totalorder %v134_v24, %v3438_v20  ;;  %3005 = vmatprep.mubr.msk.bf16.mxu0 %vm309_vm5, %v268_v22  ;;  %3045 = vmatprep.mubr.msk.bf16.mxu1 %vm309_vm5, %v268_v22 }
  0xab   :  { %v2869_v26 = vsel %vm185_vm9, 1.0, %v4453_v25  ;;  %v2868_v27 = vsel %vm184_vm10, 1.0, %v4453_v25  ;;  %vm1268_vm9 = vcmask 60416  }
  0xac   :  { %v269_v28 = vpack.c.bf16 %v2869_v26, %v2868_v27 }
  0xad   :  { %v143_v29 = vpop.permute.xlu1 %142  ;;  %v140_v30 = vpop.permute.xlu0 %139 }
  0xae   :  { %vm187_vm11 = vcmp.eq.s32.totalorder %v143_v29, %v3438_v20  ;;  %vm186_vm12 = vcmp.eq.s32.totalorder %v140_v30, %v3438_v20 }
  0xaf   :  { %v2871_v31 = vsel %vm187_vm11, 1.0, %v4453_v25  ;;  %v2870_v32 = vsel %vm186_vm12, 1.0, %v4453_v25  ;;  %3006 = vmatmul.mubr.msk.bf16.gmra.mxu0 %vm309_vm5, %v269_v28  ;;  %3046 = vmatmul.mubr.msk.bf16.gmra.mxu1 %vm309_vm5, %v269_v28 }
  0xb0   :  { %v270_v33 = vpack.c.bf16 %v2871_v31, %v2870_v32 }
  0xb1   :  { %v149_v34 = vpop.permute.xlu1 %148  ;;  %v146_v35 = vpop.permute.xlu0 %145 }
  0xb2   :  { %vm189_vm13 = vcmp.eq.s32.totalorder %v149_v34, %v3438_v20  ;;  %vm188_vm14 = vcmp.eq.s32.totalorder %v146_v35, %v3438_v20  ;;  %3009 = vmatprep.mubr.msk.bf16.mxu0 %vm309_vm5, %v270_v33  ;;  %3049 = vmatprep.mubr.msk.bf16.mxu1 %vm309_vm5, %v270_v33 }
  0xb3   :  { %v2873_v37 = vsel %vm189_vm13, 1.0, %v4453_v25  ;;  %v2872_v38 = vsel %vm188_vm14, 1.0, %v4453_v25 }
  0xb4   :  { %v271_v39 = vpack.c.bf16 %v2873_v37, %v2872_v38 }
  0xb5   :  { %v155_v41 = vpop.permute.xlu1 %154  ;;  %v152_v42 = vpop.permute.xlu0 %151 }
  0xb6   :  { %vm191_vm15 = vcmp.eq.s32.totalorder %v155_v41, %v3438_v20  ;;  %vm190_vm0 = vcmp.eq.s32.totalorder %v152_v42, %v3438_v20 }
  0xb7   :  { %v2875_v43 = vsel %vm191_vm15, 1.0, %v4453_v25  ;;  %v2874_v44 = vsel %vm190_vm0, 1.0, %v4453_v25  ;;  %3010 = vmatmul.mubr.msk.bf16.gmra.mxu0 %vm309_vm5, %v271_v39  ;;  %3050 = vmatmul.mubr.msk.bf16.gmra.mxu1 %vm309_vm5, %v271_v39 }
  0xb8   :  { %v272_v45 = vpack.c.bf16 %v2875_v43, %v2874_v44 }
  0xb9   :  { %v161_v46 = vpop.permute.xlu1 %160  ;;  %v158_v47 = vpop.permute.xlu0 %157 }
  0xba   :  { %vm193_vm1 = vcmp.eq.s32.totalorder %v161_v46, %v3438_v20  ;;  %vm192_vm2 = vcmp.eq.s32.totalorder %v158_v47, %v3438_v20  ;;  %3013 = vmatprep.mubr.msk.bf16.mxu0 %vm309_vm5, %v272_v45  ;;  %3053 = vmatprep.mubr.msk.bf16.mxu1 %vm309_vm5, %v272_v45 }
  0xbb   :  { %v2877_v48 = vsel %vm193_vm1, 1.0, %v4453_v25  ;;  %v2876_v49 = vsel %vm192_vm2, 1.0, %v4453_v25 }
  0xbc   :  { %v273_v50 = vpack.c.bf16 %v2877_v48, %v2876_v49 }
  0xbf   :  { %3014 = vmatmul.mubr.msk.bf16.gmra.mxu0 %vm309_vm5, %v273_v50  ;;  %3054 = vmatmul.mubr.msk.bf16.gmra.mxu1 %vm309_vm5, %v273_v50  ;;  %vm1225_vm5 = vcmask 1041409  }
 0x147   :  { %v2987_v51 = vpop.f32.mrf.mxu0  ;;  %v3027_v53 = vpop.f32.mrf.mxu1 }
 0x148   :  { %v3541_v55 = vadd.f32 %v3027_v53, %v2987_v51 }
 0x149   :  { %v396_v56 = vpop.f32.mrf.mxu0  ;;  %v581_v57 = vpop.f32.mrf.mxu1 }
 0x14a   :  { %v3543_v58 = vadd.f32 %v581_v57, %v396_v56  ;;  %v717_v59 = vmul.f32 %v3539_v54, %v3541_v55 }
 0x14b   :  { %v2988_v60 = vpop.f32.mrf.mxu0  ;;  %v3028_v61 = vpop.f32.mrf.mxu1 }
 0x14c   :  { %v3547_v62 = vadd.f32 %v3028_v61, %v2988_v60  ;;  %v754_v63 = vsel %vm747_vm3, %v717_v59, 0.0  ;;  %v715_v0 = vmul.f32 %v3539_v54, %v3543_v58 }
 0x14d   :  { %v584_v1 = vpop.f32.mrf.mxu1  ;;  %755 = vadd.xlane.f32.xlu1 %v754_v63  ;;  %v399_v2 = vpop.f32.mrf.mxu0 }
 0x14e   :  { %v3552_v3 = vadd.f32 %v584_v1, %v399_v2  ;;  %v748_v4 = vsel %vm747_vm3, %v715_v0, 0.0  ;;  %v718_v7 = vmul.f32 %v3539_v54, %v3547_v62 }
 0x14f   :  { %749 = vadd.xlane.f32.xlu0 %v748_v4  ;;  %v2991_v8 = vpop.f32.mrf.mxu0  ;;  %v3031_v10 = vpop.f32.mrf.mxu1 }
 0x150   :  { %v3557_v11 = vadd.f32 %v3031_v10, %v2991_v8  ;;  %v757_v12 = vsel %vm747_vm3, %v718_v7, 0.0  ;;  %v716_v14 = vmul.f32 %v3539_v54, %v3552_v3 }
 0x151   :  { %758 = vadd.xlane.f32.xlu1 %v757_v12  ;;  %v412_v15 = vpop.f32.mrf.mxu0  ;;  %v597_v17 = vpop.f32.mrf.mxu1 }
 0x152   :  { %v3562_v19 = vadd.f32 %v597_v17, %v412_v15  ;;  %v721_v21 = vmul.f32 %v3539_v54, %v3557_v11  ;;  %v751_v26 = vsel %vm747_vm3, %v716_v14, 0.0 }
 0x153   :  { %v2992_v22 = vpop.f32.mrf.mxu0  ;;  %v3032_v23 = vpop.f32.mrf.mxu1 }
 0x154   :  { %v3566_v24 = vadd.f32 %v3032_v23, %v2992_v22  ;;  %v766_v27 = vsel %vm747_vm3, %v721_v21, 0.0  ;;  %v719_v28 = vmul.f32 %v3539_v54, %v3562_v19 }
 0x155   :  { %752 = vadd.xlane.f32.xlu1 %v751_v26  ;;  %v600_v29 = vpop.f32.mrf.mxu1  ;;  %767 = vadd.xlane.f32.xlu0 %v766_v27  ;;  %v415_v30 = vpop.f32.mrf.mxu0 }
 0x156   :  { %v3572_v31 = vadd.f32 %v600_v29, %v415_v30  ;;  %v760_v35 = vsel %vm747_vm3, %v719_v28, 0.0  ;;  %v722_v37 = vmul.f32 %v3539_v54, %v3566_v24 }
 0x157   :  { %v2995_v32 = vpop.f32.mrf.mxu0  ;;  %v3035_v33 = vpop.f32.mrf.mxu1 }
 0x158   :  { %v3574_v34 = vadd.f32 %v3035_v33, %v2995_v32  ;;  %v720_v45 = vmul.f32 %v3539_v54, %v3572_v31  ;;  %v769_v47 = vsel %vm747_vm3, %v722_v37, 0.0 }
 0x159   :  { %761 = vadd.xlane.f32.xlu0 %v760_v35  ;;  %v428_v38 = vpop.f32.mrf.mxu0  ;;  %v613_v39 = vpop.f32.mrf.mxu1 }
 0x15a   :  { %v3579_v41 = vadd.f32 %v613_v39, %v428_v38  ;;  %v725_v42 = vmul.f32 %v3539_v54, %v3574_v34  ;;  %v763_v57 = vsel %vm747_vm3, %v720_v45, 0.0 }
 0x15b   :  { %v2996_v43 = vpop.f32.mrf.mxu0  ;;  %v3036_v44 = vpop.f32.mrf.mxu1 }
 0x15c   :  { %v3585_v46 = vadd.f32 %v3036_v44, %v2996_v43  ;;  %v778_v48 = vsel %vm747_vm3, %v725_v42, 0.0  ;;  %v723_v49 = vmul.f32 %v3539_v54, %v3579_v41 }
 0x15d   :  { %770 = vadd.xlane.f32.xlu0 %v769_v47  ;;  %v616_v50 = vpop.f32.mrf.mxu1  ;;  %779 = vadd.xlane.f32.xlu1 %v778_v48  ;;  %v431_v51 = vpop.f32.mrf.mxu0 }
 0x15e   :  { %v3592_v59 = vadd.f32 %v616_v50, %v431_v51  ;;  %v772_v61 = vsel %vm747_vm3, %v723_v49, 0.0  ;;  %v726_v63 = vmul.f32 %v3539_v54, %v3585_v46 }
 0x15f   :  { %v2999_v53 = vpop.f32.mrf.mxu0  ;;  %v3039_v56 = vpop.f32.mrf.mxu1 }
 0x160   :  { %v3594_v60 = vadd.f32 %v3039_v56, %v2999_v53  ;;  %v781_v10 = vsel %vm747_vm3, %v726_v63, 0.0  ;;  %v724_v14 = vmul.f32 %v3539_v54, %v3592_v59 }
 0x161   :  { %764 = vadd.xlane.f32.xlu0 %v763_v57  ;;  %773 = vadd.xlane.f32.xlu1 %v772_v61  ;;  %v444_v0 = vpop.f32.mrf.mxu0  ;;  %v629_v1 = vpop.f32.mrf.mxu1 }
 0x162   :  { %v729_v2 = vmul.f32 %v3539_v54, %v3594_v60  ;;  %v3601_v8 = vadd.f32 %v629_v1, %v444_v0  ;;  %v775_v28 = vsel %vm747_vm3, %v724_v14, 0.0 }
 0x163   :  { %v3000_v4 = vpop.f32.mrf.mxu0  ;;  %v3040_v7 = vpop.f32.mrf.mxu1 }
 0x164   :  { %v790_v12 = vsel %vm747_vm3, %v729_v2, 0.0  ;;  %v3609_v22 = vadd.f32 %v3040_v7, %v3000_v4  ;;  %v727_v30 = vmul.f32 %v3539_v54, %v3601_v8 }
 0x165   :  { %782 = vadd.xlane.f32.xlu0 %v781_v10  ;;  %v632_v15 = vpop.f32.mrf.mxu1  ;;  %791 = vadd.xlane.f32.xlu1 %v790_v12  ;;  %v447_v17 = vpop.f32.mrf.mxu0 }
 0x166   :  { %v3607_v21 = vadd.f32 %v632_v15, %v447_v17  ;;  %v730_v42 = vmul.f32 %v3539_v54, %v3609_v22  ;;  %v784_v44 = vsel %vm747_vm3, %v727_v30, 0.0 }
 0x167   :  { %v3003_v23 = vpop.f32.mrf.mxu0  ;;  %v3043_v26 = vpop.f32.mrf.mxu1 }
 0x168   :  { %v3611_v27 = vadd.f32 %v3043_v26, %v3003_v23  ;;  %v728_v29 = vmul.f32 %v3539_v54, %v3607_v21  ;;  %v793_v53 = vsel %vm747_vm3, %v730_v42, 0.0 }
 0x169   :  { %776 = vadd.xlane.f32.xlu0 %v775_v28  ;;  %v460_v32 = vpop.f32.mrf.mxu0  ;;  %v645_v33 = vpop.f32.mrf.mxu1 }
 0x16a   :  { %v787_v35 = vsel %vm747_vm3, %v728_v29, 0.0  ;;  %v733_v37 = vmul.f32 %v3539_v54, %v3611_v27  ;;  %v3623_v43 = vadd.f32 %v645_v33, %v460_v32 }
 0x16b   :  { %788 = vadd.xlane.f32.xlu1 %v787_v35  ;;  %v3004_v38 = vpop.f32.mrf.mxu0  ;;  %v3044_v39 = vpop.f32.mrf.mxu1 }
 0x16c   :  { %v802_v49 = vsel %vm747_vm3, %v733_v37, 0.0  ;;  %v3630_v56 = vadd.f32 %v3044_v39, %v3004_v38  ;;  %v731_v63 = vmul.f32 %v3539_v54, %v3623_v43 }
 0x16d   :  { %785 = vadd.xlane.f32.xlu0 %v784_v44  ;;  %v463_v45 = vpop.f32.mrf.mxu0  ;;  %v648_v47 = vpop.f32.mrf.mxu1 }
 0x16e   :  { %v3626_v48 = vadd.f32 %v648_v47, %v463_v45  ;;  %v796_v14 = vsel %vm747_vm3, %v731_v63, 0.0  ;;  %v734_v15 = vmul.f32 %v3539_v54, %v3630_v56 }
 0x16f   :  { %803 = vadd.xlane.f32.xlu1 %v802_v49  ;;  %v3007_v50 = vpop.f32.mrf.mxu0  ;;  %v3047_v51 = vpop.f32.mrf.mxu1 }
 0x170   :  { %v3632_v57 = vadd.f32 %v3047_v51, %v3007_v50  ;;  %v732_v61 = vmul.f32 %v3539_v54, %v3626_v48  ;;  %v805_v35 = vsel %vm747_vm3, %v734_v15, 0.0 }
 0x171   :  { %794 = vadd.xlane.f32.xlu0 %v793_v53  ;;  %v476_v0 = vpop.f32.mrf.mxu0  ;;  %v661_v1 = vpop.f32.mrf.mxu1 }
 0x172   :  { %v799_v2 = vsel %vm747_vm3, %v732_v61, 0.0  ;;  %v737_v4 = vmul.f32 %v3539_v54, %v3632_v57  ;;  %v3641_v12 = vadd.f32 %v661_v1, %v476_v0 }
 0x173   :  { %800 = vadd.xlane.f32.xlu1 %v799_v2  ;;  %v3008_v7 = vpop.f32.mrf.mxu0  ;;  %v3048_v10 = vpop.f32.mrf.mxu1 }
 0x174   :  { %v814_v28 = vsel %vm747_vm3, %v737_v4, 0.0  ;;  %v3649_v29 = vadd.f32 %v3048_v10, %v3008_v7  ;;  %v735_v38 = vmul.f32 %v3539_v54, %v3641_v12 }
 0x175   :  { %797 = vadd.xlane.f32.xlu0 %v796_v14  ;;  %v479_v17 = vpop.f32.mrf.mxu0  ;;  %v664_v23 = vpop.f32.mrf.mxu1 }
 0x176   :  { %v3646_v26 = vadd.f32 %v664_v23, %v479_v17  ;;  %v738_v50 = vmul.f32 %v3539_v54, %v3649_v29  ;;  %v808_v53 = vsel %vm747_vm3, %v735_v38, 0.0 }
 0x177   :  { %815 = vadd.xlane.f32.xlu1 %v814_v28  ;;  %v3011_v30 = vpop.f32.mrf.mxu0  ;;  %v3051_v32 = vpop.f32.mrf.mxu1 }
 0x178   :  { %v3651_v33 = vadd.f32 %v3051_v32, %v3011_v30  ;;  %v736_v37 = vmul.f32 %v3539_v54, %v3646_v26  ;;  %v817_v7 = vsel %vm747_vm3, %v738_v50, 0.0 }
 0x179   :  { %806 = vadd.xlane.f32.xlu0 %v805_v35  ;;  %v492_v39 = vpop.f32.mrf.mxu0  ;;  %v677_v42 = vpop.f32.mrf.mxu1 }
 0x17a   :  { %v811_v44 = vsel %vm747_vm3, %v736_v37, 0.0  ;;  %v741_v45 = vmul.f32 %v3539_v54, %v3651_v33  ;;  %v3663_v51 = vadd.f32 %v677_v42, %v492_v39 }
 0x17b   :  { %812 = vadd.xlane.f32.xlu1 %v811_v44  ;;  %v3012_v47 = vpop.f32.mrf.mxu0  ;;  %v3052_v49 = vpop.f32.mrf.mxu1 }
 0x17c   :  { %4474 = vst [vmem:[#allocation12_spill] sm:$0xff] %v3663_v51  ;;  %v826_v1 = vsel %vm747_vm3, %v741_v45, 0.0  ;;  %v3670_v10 = vadd.f32 %v3052_v49, %v3012_v47  ;;  %v739_v17 = vmul.f32 %v3539_v54, %v3663_v51 }
 0x17d   :  { %809 = vadd.xlane.f32.xlu0 %v808_v53  ;;  %v495_v61 = vpop.f32.mrf.mxu0  ;;  %v680_v63 = vpop.f32.mrf.mxu1 }
 0x17e   :  { %v3666_v0 = vadd.f32 %v680_v63, %v495_v61  ;;  %4475 = vst [vmem:[#allocation13_spill] sm:$0xff] %v3670_v10  ;;  %v820_v39 = vsel %vm747_vm3, %v739_v17, 0.0  ;;  %v742_v42 = vmul.f32 %v3539_v54, %v3670_v10 }
 0x17f   :  { %827 = vadd.xlane.f32.xlu1 %v826_v1  ;;  %v3015_v2 = vpop.f32.mrf.mxu0  ;;  %v3055_v4 = vpop.f32.mrf.mxu1 }
 0x180   :  { %v3672_v14 = vadd.f32 %v3055_v4, %v3015_v2  ;;  %v740_v15 = vmul.f32 %v3539_v54, %v3666_v0  ;;  %v829_v53 = vsel %vm747_vm3, %v742_v42, 0.0 }
 0x181   :  { %818 = vadd.xlane.f32.xlu0 %v817_v7  ;;  %v508_v23 = vpop.f32.mrf.mxu0  ;;  %v693_v28 = vpop.f32.mrf.mxu1 }
 0x182   :  { %4476 = vst [vmem:[#allocation14_spill] sm:$0xff] %v3672_v14  ;;  %v823_v30 = vsel %vm747_vm3, %v740_v15, 0.0  ;;  %v745_v32 = vmul.f32 %v3539_v54, %v3672_v14  ;;  %v3681_v38 = vadd.f32 %v693_v28, %v508_v23  ;;  %v3702_v15 = vsub.s32 7, %v3350_v36 }
 0x183   :  { %824 = vadd.xlane.f32.xlu1 %v823_v30  ;;  %v3016_v35 = vpop.f32.mrf.mxu0  ;;  %v3056_v37 = vpop.f32.mrf.mxu1  ;;  %v3707_v23 = vsub.s32 6, %v3350_v36 }
 0x184   :  { %4477 = vst [vmem:[#allocation15_spill] sm:$0xff] %v3681_v38  ;;  %v838_v49 = vsel %vm747_vm3, %v745_v32, 0.0  ;;  %v3689_v50 = vadd.f32 %v3056_v37, %v3016_v35  ;;  %v743_v63 = vmul.f32 %v3539_v54, %v3681_v38  ;;  %4480 = vst [vmem:[#allocation18_spill] sm:$0xff] %v3702_v15  ;;  %v1045_v17 = vrot.slane %v3409_v6, %v3702_v15  ;;  %v963_v30 = vpop.permute.xlu1 %962  ;;  %v966_v35 = vpop.permute.xlu0 %965 }
 0x185   :  { %821 = vadd.xlane.f32.xlu0 %v820_v39  ;;  %v511_v44 = vpop.f32.mrf.mxu0  ;;  %v696_v45 = vpop.f32.mrf.mxu1  ;;  %4481 = vst [vmem:[#allocation19_spill] sm:$0xff] %v3707_v23  ;;  %v1038_v28 = vrot.slane %v3409_v6, %v3707_v23  ;;  %vm985_vm8 = vcmp.lt.s32.totalorder %v3350_v36, %v963_v30  ;;  %vm986_vm12 = vcmp.lt.s32.totalorder %v3350_v36, %v966_v35 }
 0x186   :  { %v3686_v47 = vadd.f32 %v696_v45, %v511_v44  ;;  %4479 = vst [vmem:[#allocation17_spill] sm:$0xff] %v3689_v50  ;;  %v832_v2 = vsel %vm747_vm3, %v743_v63, 0.0  ;;  %v746_v4 = vmul.f32 %v3539_v54, %v3689_v50 }
 0x187   :  { %839 = vadd.xlane.f32.xlu1 %v838_v49 }
 0x188   :  { %4478 = vst [vmem:[#allocation16_spill] sm:$0xff] %v3686_v47  ;;  %v744_v61 = vmul.f32 %v3539_v54, %v3686_v47  ;;  %v841_v7 = vsel %vm747_vm3, %v746_v4, 0.0  ;;  %v3711_v54 = vpop.permute.xlu1 %968  ;;  %v3717_v39 = vpop.permute.xlu0 %974 }
 0x189   :  { %830 = vadd.xlane.f32.xlu0 %v829_v53  ;;  %vm987_vm15 = vcmp.lt.s32.totalorder %v3350_v36, %v3711_v54 }
 0x18a   :  { %v835_v1 = vsel %vm747_vm3, %v744_v61, 0.0 }
 0x18b   :  { %836 = vadd.xlane.f32.xlu1 %v835_v1 }
 0x18c   :  { %v3713_v32 = vpop.permute.xlu1 %971  ;;  %v3719_v44 = vpop.permute.xlu0 %980 }
 0x18d   :  { %833 = vadd.xlane.f32.xlu0 %v832_v2  ;;  %vm988_vm2 = vcmp.lt.s32.totalorder %v3350_v36, %v3713_v32 }
 0x190   :  { %v3715_v37 = vpop.permute.xlu1 %977  ;;  %v1006_v49 = vpop.permute.xlu0 %1005 }
 0x191   :  { %842 = vadd.xlane.f32.xlu0 %v841_v7  ;;  %vm1050_vm11 = vcmp.ge.s32.totalorder %v3438_v20, %v1006_v49 }
 0x192   :  { %vm1058_vm13 = vmand %vm986_vm12, %vm1050_vm11 }
 0x194   :  { %v999_v42 = vpop.permute.xlu1 %998  ;;  %v3725_v6 = vpop.permute.xlu0 %1012 }
 0x195   :  { %vm1049_vm6 = vcmp.ge.s32.totalorder %v3438_v20, %v999_v42  ;;  %vm1051_vm14 = vcmp.ge.s32.totalorder %v3438_v20, %v3725_v6 }
 0x196   :  { %vm1057_vm10 = vmand %vm985_vm8, %vm1049_vm6 }
 0x197   :  { %vm1059_vm0 = vmand %vm987_vm15, %vm1051_vm14 }
 0x198   :  { %v3721_v45 = vpop.permute.xlu1 %983  ;;  %v3729_v63 = vpop.permute.xlu0 %1026 }
 0x199   :  { %vm1053_vm8 = vcmp.ge.s32.totalorder %v3438_v20, %v3729_v63 }
 0x19c   :  { %1047 = vbcast.lane.b32.xlu1 %v1045_v17, 256  ;;  %v3723_v53 = vpop.permute.xlu1 %1019  ;;  %v3733_v17 = vsub.s32 %v3438_v20, %v3350_v36 }
 0x19d   :  { %vm1052_vm1 = vcmp.ge.s32.totalorder %v3438_v20, %v3723_v53 }
 0x19e   :  { %vm1060_vm6 = vmand %vm988_vm2, %vm1052_vm1  ;;  %vm991_vm1 = vcmp.lt.s32.totalorder %v3350_v36, %v3719_v44 }
 0x1a0   :  { %v3727_v61 = vpop.permute.xlu1 %1033 }
 0x1a1   :  { %vm1054_vm12 = vcmp.ge.s32.totalorder %v3438_v20, %v3727_v61 }
 0x1a7   :  { %1040 = vbcast.lane.b32.xlu0 %v1038_v28, 256 }
 0x1d6   :  { %v756_v1 = vpop.xlane.xlu1 %755 }
 0x1d7   :  { %v846_v28 = vmul.f32 0.1, %v756_v1 }
 0x1d8   :  { %v750_v2 = vpop.xlane.xlu0 %749 }
 0x1d9   :  { %v844_v7 = vmul.f32 0.1, %v750_v2  ;;  %v1108_v38 = vrot.slane %v846_v28, %v3733_v17 }
 0x1da   :  { %v759_v4 = vpop.xlane.xlu1 %758 }
 0x1db   :  { %v847_v15 = vmul.f32 0.1, %v759_v4  ;;  %v1100_v18 = vrot.slane %v844_v7, %v3733_v17 }
 0x1dd   :  { %v1112_v50 = vrot.slane %v847_v15, %v3733_v17 }
 0x1de   :  { %v753_v25 = vpop.xlane.xlu1 %752  ;;  %v768_v40 = vpop.xlane.xlu0 %767 }
 0x1df   :  { %v845_v23 = vmul.f32 0.1, %v753_v25  ;;  %v850_v15 = vmul.f32 0.1, %v768_v40 }
 0x1e1   :  { %v1104_v13 = vrot.slane %v845_v23, %v3733_v17 }
 0x1e2   :  { %v762_v2 = vpop.xlane.xlu0 %761 }
 0x1e3   :  { %v1226_v1 = vsel %vm1225_vm5, %v1104_v13, %v1100_v18  ;;  %v848_v28 = vmul.f32 0.1, %v762_v2 }
 0x1e4   :  { %v1228_v25 = vsel %vm1227_vm4, %v1108_v38, %v1226_v1 }
 0x1e5   :  { %v1230_v4 = vsel %vm1229_vm7, %v1112_v50, %v1228_v25  ;;  %v1116_v38 = vrot.slane %v848_v28, %v3733_v17  ;;  %v1124_v50 = vrot.slane %v850_v15, %v3733_v17 }
 0x1e6   :  { %v780_v23 = vpop.xlane.xlu1 %779  ;;  %v771_v7 = vpop.xlane.xlu0 %770  ;;  %v3744_v47 = vsel %vm1057_vm10, -999.0, %v1230_v4  ;;  %vm989_vm10 = vcmp.lt.s32.totalorder %v3350_v36, %v3717_v39 }
 0x1e7   :  { %v1269_v42 = vsel %vm1268_vm9, %v3744_v47, -inf  ;;  %v851_v18 = vmul.f32 0.1, %v771_v7  ;;  %v854_v28 = vmul.f32 0.1, %v780_v23  ;;  %vm1061_vm11 = vmand %vm989_vm10, %vm1053_vm8  ;;  %vm2148_vm10 = vcmask 1044484  }
 0x1e8   :  { %1270 = vmax.xlane.f32.xlu0 %v1269_v42 }
 0x1e9   :  { %v1128_v4 = vrot.slane %v851_v18, %v3733_v17 }
 0x1ea   :  { %v774_v14 = vpop.xlane.xlu1 %773  ;;  %v765_v13 = vpop.xlane.xlu0 %764 }
 0x1eb   :  { %v849_v30 = vmul.f32 0.1, %v765_v13  ;;  %v852_v7 = vmul.f32 0.1, %v774_v14  ;;  %v1140_v14 = vrot.slane %v854_v28, %v3733_v17 }
 0x1ed   :  { %v1120_v1 = vrot.slane %v849_v30, %v3733_v17  ;;  %v1132_v35 = vrot.slane %v852_v7, %v3733_v17 }
 0x1ee   :  { %v783_v25 = vpop.xlane.xlu0 %782  ;;  %v792_v40 = vpop.xlane.xlu1 %791 }
 0x1ef   :  { %v1231_v10 = vsel %vm1225_vm5, %v1120_v1, %v1116_v38  ;;  %v855_v49 = vmul.f32 0.1, %v783_v25 }
 0x1f0   :  { %v1232_v2 = vsel %vm1227_vm4, %v1124_v50, %v1231_v10 }
 0x1f1   :  { %v1233_v42 = vsel %vm1229_vm7, %v1128_v4, %v1232_v2  ;;  %v1144_v1 = vrot.slane %v855_v49, %v3733_v17  ;;  %v858_v4 = vmul.f32 0.1, %v792_v40 }
 0x1f2   :  { %v777_v13 = vpop.xlane.xlu0 %776  ;;  %v3757_v30 = vsel %vm1058_vm13, -999.0, %v1233_v42  ;;  %vm990_vm13 = vcmp.lt.s32.totalorder %v3350_v36, %v3715_v37 }
 0x1f3   :  { %v853_v15 = vmul.f32 0.1, %v777_v13  ;;  %v1272_v18 = vsel %vm1268_vm9, %v3757_v30, -inf  ;;  %v1156_v40 = vrot.slane %v858_v4, %v3733_v17  ;;  %vm1062_vm14 = vmand %vm990_vm13, %vm1054_vm12  ;;  %vm2152_vm12 = vcmask 1046534  }
 0x1f4   :  { %v789_v51 = vpop.xlane.xlu1 %788  ;;  %1273 = vmax.xlane.f32.xlu1 %v1272_v18  ;;  %vm2154_vm13 = vcmask 1047559  }
 0x1f5   :  { %v1136_v38 = vrot.slane %v853_v15, %v3733_v17  ;;  %v857_v10 = vmul.f32 0.1, %v789_v51 }
 0x1f6   :  { %v786_v23 = vpop.xlane.xlu0 %785 }
 0x1f7   :  { %v856_v50 = vmul.f32 0.1, %v786_v23  ;;  %v1234_v25 = vsel %vm1225_vm5, %v1136_v38, %v1132_v35  ;;  %v1152_v51 = vrot.slane %v857_v10, %v3733_v17 }
 0x1f8   :  { %v804_v2 = vpop.xlane.xlu1 %803  ;;  %v1235_v7 = vsel %vm1227_vm4, %v1140_v14, %v1234_v25 }
 0x1f9   :  { %v1148_v42 = vrot.slane %v856_v50, %v3733_v17  ;;  %v1236_v6 = vsel %vm1229_vm7, %v1144_v1, %v1235_v7  ;;  %v862_v50 = vmul.f32 0.1, %v804_v2 }
 0x1fa   :  { %v795_v28 = vpop.xlane.xlu0 %794  ;;  %v3774_v13 = vsel %vm1059_vm0, -999.0, %v1236_v6  ;;  %vm992_vm0 = vcmp.lt.s32.totalorder %v3350_v36, %v3721_v45 }
 0x1fb   :  { %v859_v49 = vmul.f32 0.1, %v795_v28  ;;  %v1275_v15 = vsel %vm1268_vm9, %v3774_v13, -inf  ;;  %v1237_v54 = vsel %vm1225_vm5, %v1152_v51, %v1148_v42  ;;  %v1172_v2 = vrot.slane %v862_v50, %v3733_v17 }
 0x1fc   :  { %v801_v18 = vpop.xlane.xlu1 %800  ;;  %1276 = vmax.xlane.f32.xlu0 %v1275_v15  ;;  %v1238_v14 = vsel %vm1227_vm4, %v1156_v40, %v1237_v54 }
 0x1fd   :  { %v1160_v35 = vrot.slane %v859_v49, %v3733_v17  ;;  %v861_v38 = vmul.f32 0.1, %v801_v18 }
 0x1fe   :  { %v798_v10 = vpop.xlane.xlu0 %797 }
 0x1ff   :  { %v860_v23 = vmul.f32 0.1, %v798_v10  ;;  %v1239_v1 = vsel %vm1229_vm7, %v1160_v35, %v1238_v14  ;;  %v1168_v4 = vrot.slane %v861_v38, %v3733_v17 }
 0x200   :  { %v816_v25 = vpop.xlane.xlu1 %815  ;;  %v3787_v53 = vsel %vm1060_vm6, -999.0, %v1239_v1 }
 0x201   :  { %v1164_v7 = vrot.slane %v860_v23, %v3733_v17  ;;  %v1278_v51 = vsel %vm1268_vm9, %v3787_v53, -inf  ;;  %v866_v38 = vmul.f32 0.1, %v816_v25 }
 0x202   :  { %1279 = vmax.xlane.f32.xlu0 %v1278_v51  ;;  %v807_v32 = vpop.xlane.xlu0 %806 }
 0x203   :  { %v863_v42 = vmul.f32 0.1, %v807_v32  ;;  %v1240_v6 = vsel %vm1225_vm5, %v1168_v4, %v1164_v7  ;;  %v1188_v25 = vrot.slane %v866_v38, %v3733_v17 }
 0x204   :  { %v813_v28 = vpop.xlane.xlu1 %812  ;;  %v1241_v40 = vsel %vm1227_vm4, %v1172_v2, %v1240_v6 }
 0x205   :  { %v1176_v49 = vrot.slane %v863_v42, %v3733_v17  ;;  %v865_v15 = vmul.f32 0.1, %v813_v28 }
 0x206   :  { %v810_v54 = vpop.xlane.xlu0 %809 }
 0x207   :  { %v864_v18 = vmul.f32 0.1, %v810_v54  ;;  %v1242_v35 = vsel %vm1229_vm7, %v1176_v49, %v1241_v40  ;;  %v1184_v63 = vrot.slane %v865_v15, %v3733_v17 }
 0x208   :  { %v828_v10 = vpop.xlane.xlu1 %827  ;;  %v3802_v14 = vsel %vm1061_vm11, -999.0, %v1242_v35  ;;  %vm2150_vm11 = vcmask 1045509  }
 0x209   :  { %v1180_v23 = vrot.slane %v864_v18, %v3733_v17  ;;  %v1281_v1 = vsel %vm1268_vm9, %v3802_v14, -inf }
 0x20a   :  { %1282 = vmax.xlane.f32.xlu1 %v1281_v1  ;;  %v819_v39 = vpop.xlane.xlu0 %818  ;;  %v870_v1 = vmul.f32 0.1, %v828_v10 }
 0x20b   :  { %v867_v50 = vmul.f32 0.1, %v819_v39  ;;  %v1243_v4 = vsel %vm1225_vm5, %v1184_v63, %v1180_v23 }
 0x20c   :  { %v825_v7 = vpop.xlane.xlu1 %824  ;;  %v1244_v42 = vsel %vm1227_vm4, %v1188_v25, %v1243_v4  ;;  %v1204_v10 = vrot.slane %v870_v1, %v3733_v17 }
 0x20d   :  { %v1192_v51 = vrot.slane %v867_v50, %v3733_v17  ;;  %v869_v18 = vmul.f32 0.1, %v825_v7 }
 0x20e   :  { %v822_v32 = vpop.xlane.xlu0 %821 }
 0x20f   :  { %v1245_v6 = vsel %vm1229_vm7, %v1192_v51, %v1244_v42  ;;  %v868_v15 = vmul.f32 0.1, %v822_v32  ;;  %v1200_v25 = vrot.slane %v869_v18, %v3733_v17 }
 0x210   :  { %v840_v2 = vpop.xlane.xlu1 %839  ;;  %v3817_v28 = vsel %vm1062_vm14, -999.0, %v1245_v6 }
 0x211   :  { %v1284_v61 = vsel %vm1268_vm9, %v3817_v28, -inf  ;;  %v1196_v38 = vrot.slane %v868_v15, %v3733_v17  ;;  %v874_v63 = vmul.f32 0.1, %v840_v2 }
 0x212   :  { %1285 = vmax.xlane.f32.xlu0 %v1284_v61  ;;  %v831_v49 = vpop.xlane.xlu0 %830 }
 0x213   :  { %v871_v23 = vmul.f32 0.1, %v831_v49  ;;  %v1220_v7 = vrot.slane %v874_v63, %v3733_v17  ;;  %v1246_v2 = vsel %vm1225_vm5, %v1200_v25, %v1196_v38 }
 0x214   :  { %v837_v54 = vpop.xlane.xlu1 %836 }
 0x215   :  { %v873_v40 = vmul.f32 0.1, %v837_v54  ;;  %v1208_v6 = vrot.slane %v871_v23, %v3733_v17 }
 0x216   :  { %v834_v35 = vpop.xlane.xlu0 %833 }
 0x217   :  { %v872_v37 = vmul.f32 0.1, %v834_v35  ;;  %v1216_v39 = vrot.slane %v873_v40, %v3733_v17  ;;  %v1247_v40 = vsel %vm1227_vm4, %v1204_v10, %v1246_v2 }
 0x218   :  { %v1048_v4 = vpop.permute.xlu1 %1047  ;;  %v1248_v35 = vsel %vm1229_vm7, %v1208_v6, %v1247_v40 }
 0x219   :  { %v1212_v50 = vrot.slane %v872_v37, %v3733_v17  ;;  %vm1056_vm15 = vcmp.ge.s32.totalorder %v3438_v20, %v1048_v4 }
 0x21a   :  { %v843_v51 = vpop.xlane.xlu0 %842  ;;  %vm1064_vm6 = vmand %vm992_vm0, %vm1056_vm15  ;;  %vm2328_vm15 = vcmask 27648  }
 0x21b   :  { %v875_v42 = vmul.f32 0.1, %v843_v51  ;;  %v1249_v32 = vsel %vm1225_vm5, %v1216_v39, %v1212_v50 }
 0x21c   :  { %v1250_v15 = vsel %vm1227_vm4, %v1220_v7, %v1249_v32 }
 0x21d   :  { %v1224_v61 = vrot.slane %v875_v42, %v3733_v17 }
 0x21e   :  { %v1041_v49 = vpop.permute.xlu0 %1040 }
 0x21f   :  { %vm1055_vm2 = vcmp.ge.s32.totalorder %v3438_v20, %v1041_v49  ;;  %v1251_v54 = vsel %vm1229_vm7, %v1224_v61, %v1250_v15 }
 0x220   :  { %v1267_v18 = vsel %vm1064_vm6, -999.0, %v1251_v54  ;;  %vm1063_vm8 = vmand %vm991_vm1, %vm1055_vm2 }
 0x221   :  { %v1290_v37 = vsel %vm1268_vm9, %v1267_v18, -inf  ;;  %v1266_v45 = vsel %vm1063_vm8, -999.0, %v1248_v35 }
 0x222   :  { %1291 = vmax.xlane.f32.xlu0 %v1290_v37  ;;  %v1287_v38 = vsel %vm1268_vm9, %v1266_v45, -inf }
 0x223   :  { %1288 = vmax.xlane.f32.xlu1 %v1287_v38 }
 0x271   :  { %v1271_v63 = vpop.xlane.xlu0 %1270 }
 0x272   :  { %v1293_v36 = vsub.f32 %v3744_v47, %v1271_v63 }
 0x274   :  { %v1301_v44 = vmul.f32 1.442695, %v1293_v36 }
 0x276   :  { %3100 = vpow2.f32 %v1301_v44 }
 0x27d   :  { %v1274_v23 = vpop.xlane.xlu1 %1273 }
 0x27e   :  { %v1294_v1 = vsub.f32 %v3757_v30, %v1274_v23 }
 0x280   :  { %v1303_v39 = vmul.f32 1.442695, %v1294_v1 }
 0x282   :  { %3102 = vpow2.f32 %v1303_v39 }
 0x283   :  { %v3101_v50 = vpop.eup %3100 }
 0x284   :  { %v1317_v4 = vsel %vm1268_vm9, %v3101_v50, 0.0 }
 0x285   :  { %1318 = vadd.xlane.f32.xlu1 %v1317_v4  ;;  %v1277_v25 = vpop.xlane.xlu0 %1276 }
 0x286   :  { %v1295_v51 = vsub.f32 %v3774_v13, %v1277_v25 }
 0x288   :  { %v1305_v42 = vmul.f32 1.442695, %v1295_v51 }
 0x28a   :  { %3104 = vpow2.f32 %v1305_v42 }
 0x28b   :  { %v1280_v32 = vpop.xlane.xlu0 %1279 }
 0x28c   :  { %v1296_v7 = vsub.f32 %v3787_v53, %v1280_v32 }
 0x28e   :  { %v1307_v47 = vmul.f32 1.442695, %v1296_v7 }
 0x28f   :  { %v3848_v6 = vpop.eup %3102 }
 0x290   :  { %3106 = vpow2.f32 %v1307_v47  ;;  %v1320_v30 = vsel %vm1268_vm9, %v3848_v6, 0.0 }
 0x291   :  { %1321 = vadd.xlane.f32.xlu0 %v1320_v30 }
 0x293   :  { %v1283_v2 = vpop.xlane.xlu1 %1282 }
 0x294   :  { %v1297_v10 = vsub.f32 %v3802_v14, %v1283_v2 }
 0x296   :  { %v1309_v61 = vmul.f32 1.442695, %v1297_v10 }
 0x297   :  { %v3853_v49 = vpop.eup %3104 }
 0x298   :  { %3108 = vpow2.f32 %v1309_v61  ;;  %v1323_v13 = vsel %vm1268_vm9, %v3853_v49, 0.0 }
 0x299   :  { %1324 = vadd.xlane.f32.xlu1 %v1323_v13 }
 0x29b   :  { %v1286_v53 = vpop.xlane.xlu0 %1285 }
 0x29c   :  { %v1298_v15 = vsub.f32 %v3817_v28, %v1286_v53 }
 0x29d   :  { %v3858_v54 = vpop.eup %3106 }
 0x29e   :  { %v1311_v40 = vmul.f32 1.442695, %v1298_v15  ;;  %v1326_v35 = vsel %vm1268_vm9, %v3858_v54, 0.0 }
 0x29f   :  { %1327 = vadd.xlane.f32.xlu0 %v1326_v35 }
 0x2a0   :  { %3110 = vpow2.f32 %v1311_v40 }
 0x2a5   :  { %v3862_v14 = vpop.eup %3108 }
 0x2a6   :  { %v1329_v37 = vsel %vm1268_vm9, %v3862_v14, 0.0 }
 0x2a7   :  { %1330 = vadd.xlane.f32.xlu1 %v1329_v37 }
 0x2ab   :  { %v1292_v38 = vpop.xlane.xlu0 %1291 }
 0x2ac   :  { %v1300_v63 = vsub.f32 %v1267_v18, %v1292_v38  ;;  %v1289_v36 = vpop.xlane.xlu1 %1288 }
 0x2ad   :  { %v3866_v44 = vpop.eup %3110  ;;  %v1299_v28 = vsub.f32 %v1266_v45, %v1289_v36 }
 0x2ae   :  { %v1315_v23 = vmul.f32 1.442695, %v1300_v63  ;;  %v1332_v1 = vsel %vm1268_vm9, %v3866_v44, 0.0 }
 0x2af   :  { %v1313_v39 = vmul.f32 1.442695, %v1299_v28  ;;  %1333 = vadd.xlane.f32.xlu0 %v1332_v1 }
 0x2b0   :  { %3112 = vpow2.f32 %v1315_v23 }
 0x2b1   :  { %3114 = vpow2.f32 %v1313_v39 }
 0x2bd   :  { %v3870_v4 = vpop.eup %3112 }
 0x2be   :  { %v3872_v25 = vpop.eup %3114  ;;  %v1338_v51 = vsel %vm1268_vm9, %v3870_v4, 0.0 }
 0x2bf   :  { %1339 = vadd.xlane.f32.xlu0 %v1338_v51  ;;  %v1335_v18 = vsel %vm1268_vm9, %v3872_v25, 0.0 }
 0x2c0   :  { %1336 = vadd.xlane.f32.xlu1 %v1335_v18 }
 0x30e   :  { %v1319_v45 = vpop.xlane.xlu1 %1318 }
 0x30f   :  { %3116 = vrcp.f32 %v1319_v45 }
 0x31a   :  { %v1322_v42 = vpop.xlane.xlu0 %1321 }
 0x31b   :  { %3118 = vrcp.f32 %v1322_v42 }
 0x31c   :  { %v3117_v32 = vpop.eup %3116 }
 0x31d   :  { %v1349_v7 = vmul.f32 %v3117_v32, %v1319_v45 }
 0x31f   :  { %v1357_v47 = vsub.f32 2.0, %v1349_v7 }
 0x321   :  { %v1365_v30 = vmul.f32 %v3117_v32, %v1357_v47 }
 0x322   :  { %v1325_v2 = vpop.xlane.xlu1 %1324 }
 0x323   :  { %v1373_v10 = vmul.f32 %v3101_v50, %v1365_v30  ;;  %3120 = vrcp.f32 %v1325_v2 }
 0x325   :  { %1381 = vst.msk [vmem:[#allocation2] sm:$0xf] %vm1268_vm9, %v1373_v10  ;;  %v1399_v61 = vrot.slane %v1373_v10, %v3404_v5  ;;  %v1413_v13 = vrot.slane %v1373_v10, %v3428_v16  ;;  %v1406_v35 = vrot.slane %v1373_v10, %v3415_v9  ;;  %v1392_v50 = vrot.slane %v1373_v10, %v3385_v52 }
 0x327   :  { %1401 = vbcast.lane.b32.xlu1 %v1399_v61, 256  ;;  %1415 = vbcast.lane.b32.xlu0 %v1413_v13, 256 }
 0x328   :  { %v3119_v53 = vpop.eup %3118  ;;  %v1328_v15 = vpop.xlane.xlu0 %1327 }
 0x329   :  { %v1350_v40 = vmul.f32 %v3119_v53, %v1322_v42  ;;  %3122 = vrcp.f32 %v1328_v15 }
 0x32b   :  { %v1358_v37 = vsub.f32 2.0, %v1350_v40  ;;  %1408 = vbcast.lane.b32.xlu1 %v1406_v35, 256 }
 0x32d   :  { %v1366_v38 = vmul.f32 %v3119_v53, %v1358_v37 }
 0x32f   :  { %v1374_v63 = vmul.f32 %v3848_v6, %v1366_v38  ;;  %1394 = vbcast.lane.b32.xlu1 %v1392_v50, 256 }
 0x330   :  { %v3121_v36 = vpop.eup %3120  ;;  %v1331_v28 = vpop.xlane.xlu1 %1330 }
 0x331   :  { %1382 = vst.msk [vmem:[#allocation2 + $0x4] sm:$0xf] %vm1268_vm9, %v1374_v63  ;;  %v1351_v23 = vmul.f32 %v3121_v36, %v1325_v2  ;;  %3124 = vrcp.f32 %v1331_v28  ;;  %v1434_v1 = vrot.slane %v1374_v63, %v3415_v9  ;;  %v1427_v39 = vrot.slane %v1374_v63, %v3404_v5 }
 0x332   :  { %v1441_v45 = vrot.slane %v1374_v63, %v3428_v16  ;;  %v1420_v42 = vrot.slane %v1374_v63, %v3385_v52 }
 0x333   :  { %v1359_v51 = vsub.f32 2.0, %v1351_v23  ;;  %1436 = vbcast.lane.b32.xlu1 %v1434_v1, 256  ;;  %1429 = vbcast.lane.b32.xlu0 %v1427_v39, 256 }
 0x335   :  { %v1367_v18 = vmul.f32 %v3121_v36, %v1359_v51 }
 0x336   :  { %v3123_v6 = vpop.eup %3122 }
 0x337   :  { %v1375_v32 = vmul.f32 %v3853_v49, %v1367_v18  ;;  %v1352_v7 = vmul.f32 %v3123_v6, %v1328_v15  ;;  %1443 = vbcast.lane.b32.xlu0 %v1441_v45, 256  ;;  %1422 = vbcast.lane.b32.xlu1 %v1420_v42, 256 }
 0x338   :  { %v1334_v47 = vpop.xlane.xlu0 %1333 }
 0x339   :  { %1383 = vst.msk [vmem:[#allocation2 + $0x8] sm:$0xf] %vm1268_vm9, %v1375_v32  ;;  %v1360_v30 = vsub.f32 2.0, %v1352_v7  ;;  %3126 = vrcp.f32 %v1334_v47  ;;  %v1455_v2 = vrot.slane %v1375_v32, %v3404_v5  ;;  %v1462_v10 = vrot.slane %v1375_v32, %v3415_v9 }
 0x33a   :  { %v1469_v53 = vrot.slane %v1375_v32, %v3428_v16  ;;  %v1448_v49 = vrot.slane %v1375_v32, %v3385_v52 }
 0x33b   :  { %v1368_v61 = vmul.f32 %v3123_v6, %v1360_v30  ;;  %1457 = vbcast.lane.b32.xlu0 %v1455_v2, 256  ;;  %1464 = vbcast.lane.b32.xlu1 %v1462_v10, 256 }
 0x33d   :  { %v1376_v13 = vmul.f32 %v3858_v54, %v1368_v61 }
 0x33e   :  { %v3125_v15 = vpop.eup %3124 }
 0x33f   :  { %1384 = vst.msk [vmem:[#allocation2 + $0xc] sm:$0xf] %vm1268_vm9, %v1376_v13  ;;  %v1353_v40 = vmul.f32 %v3125_v15, %v1331_v28  ;;  %1471 = vbcast.lane.b32.xlu0 %v1469_v53, 256  ;;  %1450 = vbcast.lane.b32.xlu1 %v1448_v49, 256  ;;  %v1490_v37 = vrot.slane %v1376_v13, %v3415_v9 }
 0x340   :  { %v1483_v38 = vrot.slane %v1376_v13, %v3404_v5  ;;  %v1497_v63 = vrot.slane %v1376_v13, %v3428_v16  ;;  %v1476_v36 = vrot.slane %v1376_v13, %v3385_v52 }
 0x341   :  { %v1361_v35 = vsub.f32 2.0, %v1353_v40 }
 0x343   :  { %v1369_v50 = vmul.f32 %v3125_v15, %v1361_v35  ;;  %1492 = vbcast.lane.b32.xlu1 %v1490_v37, 256  ;;  %1485 = vbcast.lane.b32.xlu0 %v1483_v38, 256 }
 0x345   :  { %v1377_v54 = vmul.f32 %v3862_v14, %v1369_v50 }
 0x346   :  { %v3127_v23 = vpop.eup %3126 }
 0x347   :  { %1385 = vst.msk [vmem:[#allocation2 + $0x10] sm:$0xf] %vm1268_vm9, %v1377_v54  ;;  %v1354_v28 = vmul.f32 %v3127_v23, %v1334_v47  ;;  %1499 = vbcast.lane.b32.xlu0 %v1497_v63, 256  ;;  %1478 = vbcast.lane.b32.xlu1 %v1476_v36, 256  ;;  %v1511_v18 = vrot.slane %v1377_v54, %v3404_v5 }
 0x348   :  { %v1340_v1 = vpop.xlane.xlu0 %1339  ;;  %v1518_v45 = vrot.slane %v1377_v54, %v3415_v9  ;;  %v1525_v6 = vrot.slane %v1377_v54, %v3428_v16  ;;  %v1504_v32 = vrot.slane %v1377_v54, %v3385_v52 }
 0x349   :  { %v1362_v39 = vsub.f32 2.0, %v1354_v28  ;;  %3128 = vrcp.f32 %v1340_v1  ;;  %v1337_v51 = vpop.xlane.xlu1 %1336 }
 0x34a   :  { %3130 = vrcp.f32 %v1337_v51 }
 0x34b   :  { %v1370_v14 = vmul.f32 %v3127_v23, %v1362_v39  ;;  %1513 = vbcast.lane.b32.xlu0 %v1511_v18, 256  ;;  %1520 = vbcast.lane.b32.xlu1 %v1518_v45, 256 }
 0x34d   :  { %v1378_v42 = vmul.f32 %v3866_v44, %v1370_v14 }
 0x34f   :  { %1386 = vst.msk [vmem:[#allocation2 + $0x14] sm:$0xf] %vm1268_vm9, %v1378_v42  ;;  %1527 = vbcast.lane.b32.xlu0 %v1525_v6, 256  ;;  %1506 = vbcast.lane.b32.xlu1 %v1504_v32, 256  ;;  %v1546_v7 = vrot.slane %v1378_v42, %v3415_v9  ;;  %v1539_v47 = vrot.slane %v1378_v42, %v3404_v5 }
 0x350   :  { %v1553_v30 = vrot.slane %v1378_v42, %v3428_v16  ;;  %v1532_v2 = vrot.slane %v1378_v42, %v3385_v52 }
 0x353   :  { %1548 = vbcast.lane.b32.xlu1 %v1546_v7, 256  ;;  %1541 = vbcast.lane.b32.xlu0 %v1539_v47, 256 }
 0x356   :  { %v3129_v10 = vpop.eup %3128 }
 0x357   :  { %v3131_v44 = vpop.eup %3130  ;;  %v1356_v61 = vmul.f32 %v3129_v10, %v1340_v1  ;;  %1555 = vbcast.lane.b32.xlu0 %v1553_v30, 256  ;;  %1534 = vbcast.lane.b32.xlu1 %v1532_v2, 256 }
 0x358   :  { %v1355_v13 = vmul.f32 %v3131_v44, %v1337_v51 }
 0x359   :  { %v1364_v53 = vsub.f32 2.0, %v1356_v61 }
 0x35a   :  { %v1363_v49 = vsub.f32 2.0, %v1355_v13 }
 0x35b   :  { %v1372_v15 = vmul.f32 %v3129_v10, %v1364_v53 }
 0x35c   :  { %v1371_v40 = vmul.f32 %v3131_v44, %v1363_v49 }
 0x35d   :  { %v1380_v35 = vmul.f32 %v3870_v4, %v1372_v15 }
 0x35e   :  { %v1379_v37 = vmul.f32 %v3872_v25, %v1371_v40 }
 0x35f   :  { %1388 = vst.msk [vmem:[#allocation2 + $0x1c] sm:$0xf] %vm1268_vm9, %v1380_v35  ;;  %v1602_v4 = vrot.slane %v1380_v35, %v3415_v9  ;;  %v1595_v25 = vrot.slane %v1380_v35, %v3404_v5  ;;  %v1609_v36 = vrot.slane %v1380_v35, %v3428_v16  ;;  %v1588_v23 = vrot.slane %v1380_v35, %v3385_v52 }
 0x360   :  { %1387 = vst.msk [vmem:[#allocation2 + $0x18] sm:$0xf] %vm1268_vm9, %v1379_v37  ;;  %v1567_v38 = vrot.slane %v1379_v37, %v3404_v5  ;;  %v1574_v50 = vrot.slane %v1379_v37, %v3415_v9  ;;  %v1581_v54 = vrot.slane %v1379_v37, %v3428_v16  ;;  %v1560_v63 = vrot.slane %v1379_v37, %v3385_v52 }
 0x361   :  { %vm1933_vm9 = vcmask 257024  }
 0x362   :  { %1569 = vbcast.lane.b32.xlu0 %v1567_v38, 256  ;;  %1576 = vbcast.lane.b32.xlu1 %v1574_v50, 256  ;;  %v3936_v50 = vld [vmem:[%s4449_s6] ss:$0 sm:$0xff] }
 0x366   :  { %1583 = vbcast.lane.b32.xlu0 %v1581_v54, 256  ;;  %1562 = vbcast.lane.b32.xlu1 %v1560_v63, 256 }
 0x36a   :  { %1604 = vbcast.lane.b32.xlu1 %v1602_v4, 256  ;;  %1597 = vbcast.lane.b32.xlu0 %v1595_v25, 256 }
 0x36e   :  { %1611 = vbcast.lane.b32.xlu1 %v1609_v36, 256  ;;  %1590 = vbcast.lane.b32.xlu0 %v1588_v23, 256 }
 0x399   :  { %v1402_v28 = vpop.permute.xlu1 %1401  ;;  %v1416_v1 = vpop.permute.xlu0 %1415 }
 0x39a   :  { %v1614_v39 = vmul.f32 %v1402_v28, %v3552_v3  ;;  %v1616_v51 = vmul.f32 %v1416_v1, %v3547_v62 }
 0x39c   :  { %v1652_v18 = vsel %vm747_vm3, %v1614_v39, 0.0  ;;  %v1666_v45 = vsel %vm747_vm3, %v1616_v51, 0.0 }
 0x39d   :  { %v1653_v14 = vrot.slane %v1652_v18, 4  ;;  %v1667_v42 = vrot.slane %v1666_v45, 4  ;;  %v1409_v6 = vpop.permute.xlu1 %1408 }
 0x39e   :  { %v1615_v32 = vmul.f32 %v1409_v6, %v3541_v55 }
 0x39f   :  { %v1654_v7 = vadd.f32 %v1653_v14, %v1652_v18  ;;  %v1668_v47 = vadd.f32 %v1667_v42, %v1666_v45 }
 0x3a0   :  { %v1659_v30 = vsel %vm747_vm3, %v1615_v32, 0.0 }
 0x3a1   :  { %v1655_v2 = vrot.slane %v1654_v7, 2  ;;  %v1669_v10 = vrot.slane %v1668_v47, 2  ;;  %v1660_v44 = vrot.slane %v1659_v30, 4  ;;  %v1395_v61 = vpop.permute.xlu1 %1394 }
 0x3a2   :  { %v1613_v3 = vmul.f32 %v1395_v61, %v3543_v58 }
 0x3a3   :  { %v1656_v62 = vadd.f32 %v1655_v2, %v1654_v7  ;;  %v1670_v13 = vadd.f32 %v1669_v10, %v1668_v47  ;;  %v1661_v53 = vadd.f32 %v1660_v44, %v1659_v30 }
 0x3a4   :  { %v1645_v49 = vsel %vm747_vm3, %v1613_v3, 0.0 }
 0x3a5   :  { %v1657_v15 = vrot.slane %v1656_v62, 1  ;;  %v1671_v40 = vrot.slane %v1670_v13, 1  ;;  %v1662_v35 = vrot.slane %v1661_v53, 2  ;;  %v1646_v37 = vrot.slane %v1645_v49, 4  ;;  %v1437_v55 = vpop.permute.xlu1 %1436  ;;  %v1430_v38 = vpop.permute.xlu0 %1429 }
 0x3a6   :  { %v1619_v54 = vmul.f32 %v1437_v55, %v3557_v11  ;;  %v1618_v58 = vmul.f32 %v1430_v38, %v3572_v31 }
 0x3a7   :  { %v3940_v63 = vadd.f32 %v1657_v15, %v1656_v62  ;;  %v3942_v4 = vadd.f32 %v1671_v40, %v1670_v13  ;;  %v1663_v25 = vadd.f32 %v1662_v35, %v1661_v53  ;;  %v1647_v36 = vadd.f32 %v1646_v37, %v1645_v49 }
 0x3a8   :  { %v1687_v23 = vsel %vm747_vm3, %v1619_v54, 0.0  ;;  %v1680_v28 = vsel %vm747_vm3, %v1618_v58, 0.0 }
 0x3a9   :  { %v3948_v1 = vmul.f32 %v3936_v50, %v3940_v63  ;;  %v1664_v39 = vrot.slane %v1663_v25, 1  ;;  %v1648_v51 = vrot.slane %v1647_v36, 2  ;;  %v1688_v18 = vrot.slane %v1687_v23, 4  ;;  %v1423_v11 = vpop.permute.xlu1 %1422  ;;  %v1444_v45 = vpop.permute.xlu0 %1443 }
 0x3aa   :  { %v1681_v31 = vrot.slane %v1680_v28, 4  ;;  %v1617_v14 = vmul.f32 %v1423_v11, %v3562_v19  ;;  %v1620_v42 = vmul.f32 %v1444_v45, %v3566_v24  ;;  %v3954_v6 = vmul.f32 %v3936_v50, %v3942_v4 }
 0x3ab   :  { %v2013_v32 = vrot.slane %v3948_v1, 7  ;;  %v3957_v7 = vadd.f32 %v1664_v39, %v1663_v25  ;;  %v1649_v47 = vadd.f32 %v1648_v51, %v1647_v36  ;;  %v1689_v30 = vadd.f32 %v1688_v18, %v1687_v23 }
 0x3ac   :  { %v1682_v2 = vadd.f32 %v1681_v31, %v1680_v28  ;;  %v1673_v10 = vsel %vm747_vm3, %v1617_v14, 0.0  ;;  %v1694_v44 = vsel %vm747_vm3, %v1620_v42, 0.0  ;;  %v2017_v61 = vrot.slane %v3954_v6, 5 }
 0x3ad   :  { %v3964_v19 = vmul.f32 %v3936_v50, %v3957_v7  ;;  %v1650_v24 = vrot.slane %v1649_v47, 1  ;;  %v1690_v3 = vrot.slane %v1689_v30, 2  ;;  %v1674_v62 = vrot.slane %v1673_v10, 4  ;;  %v1465_v13 = vpop.permute.xlu1 %1464  ;;  %v1458_v53 = vpop.permute.xlu0 %1457 }
 0x3ae   :  { %v1683_v49 = vrot.slane %v1682_v2, 2  ;;  %v1695_v15 = vrot.slane %v1694_v44, 4  ;;  %v1623_v40 = vmul.f32 %v1465_v13, %v3574_v34  ;;  %v1622_v35 = vmul.f32 %v1458_v53, %v3592_v59 }
 0x3af   :  { %v3968_v37 = vadd.f32 %v1650_v24, %v1649_v47  ;;  %v1691_v55 = vadd.f32 %v1690_v3, %v1689_v30  ;;  %v1675_v38 = vadd.f32 %v1674_v62, %v1673_v10  ;;  %v2015_v54 = vrot.slane %v3964_v19, 6 }
 0x3b0   :  { %v1684_v58 = vadd.f32 %v1683_v49, %v1682_v2  ;;  %v1696_v25 = vadd.f32 %v1695_v15, %v1694_v44  ;;  %v1715_v36 = vsel %vm747_vm3, %v1623_v40, 0.0  ;;  %v1708_v23 = vsel %vm747_vm3, %v1622_v35, 0.0 }
 0x3b1   :  { %v1949_v28 = vmul.f32 %v3936_v50, %v3968_v37  ;;  %v1692_v39 = vrot.slane %v1691_v55, 1  ;;  %v1676_v51 = vrot.slane %v1675_v38, 2  ;;  %v1716_v34 = vrot.slane %v1715_v36, 4  ;;  %v1451_v18 = vpop.permute.xlu1 %1450  ;;  %v1472_v59 = vpop.permute.xlu0 %1471 }
 0x3b2   :  { %v1685_v11 = vrot.slane %v1684_v58, 1  ;;  %v1697_v45 = vrot.slane %v1696_v25, 2  ;;  %v1709_v31 = vrot.slane %v1708_v23, 4  ;;  %v1621_v14 = vmul.f32 %v1451_v18, %v3579_v41 }
 0x3b3   :  { %v3976_v42 = vadd.f32 %v1692_v39, %v1691_v55  ;;  %v1677_v47 = vadd.f32 %v1676_v51, %v1675_v38  ;;  %v1717_v30 = vadd.f32 %v1716_v34, %v1715_v36  ;;  %v1624_v2 = vmul.f32 %v1472_v59, %v3585_v46 }
 0x3b4   :  { %v3979_v10 = vadd.f32 %v1685_v11, %v1684_v58  ;;  %v1698_v44 = vadd.f32 %v1697_v45, %v1696_v25  ;;  %v1710_v19 = vadd.f32 %v1709_v31, %v1708_v23  ;;  %v1701_v24 = vsel %vm747_vm3, %v1621_v14, 0.0 }
 0x3b5   :  { %v3984_v3 = vmul.f32 %v3936_v50, %v3976_v42  ;;  %v1678_v62 = vrot.slane %v1677_v47, 1  ;;  %v1718_v13 = vrot.slane %v1717_v30, 2  ;;  %v1702_v53 = vrot.slane %v1701_v24, 4  ;;  %v1493_v41 = vpop.permute.xlu1 %1492  ;;  %v1486_v49 = vpop.permute.xlu0 %1485 }
 0x3b6   :  { %v3988_v15 = vmul.f32 %v3936_v50, %v3979_v10  ;;  %v1699_v46 = vrot.slane %v1698_v44, 1  ;;  %v1711_v40 = vrot.slane %v1710_v19, 2  ;;  %v1722_v35 = vsel %vm747_vm3, %v1624_v2, 0.0 }
 0x3b7   :  { %v3991_v55 = vadd.f32 %v1678_v62, %v1677_v47  ;;  %v1719_v38 = vadd.f32 %v1718_v13, %v1717_v30  ;;  %v1703_v58 = vadd.f32 %v1702_v53, %v1701_v24  ;;  %v1723_v25 = vrot.slane %v1722_v35, 4 }
 0x3b8   :  { %v2019_v36 = vrot.slane %v3988_v15, 7  ;;  %v3994_v23 = vadd.f32 %v1699_v46, %v1698_v44  ;;  %v1712_v39 = vadd.f32 %v1711_v40, %v1710_v19  ;;  %v1627_v51 = vmul.f32 %v1493_v41, %v3594_v60 }
 0x3b9   :  { %v1953_v34 = vmul.f32 %v3936_v50, %v3991_v55  ;;  %v1720_v18 = vrot.slane %v1719_v38, 1  ;;  %v1704_v59 = vrot.slane %v1703_v58, 2  ;;  %v1724_v11 = vadd.f32 %v1723_v25, %v1722_v35  ;;  %v1479_v45 = vpop.permute.xlu1 %1478  ;;  %v1500_v31 = vpop.permute.xlu0 %1499 }
 0x3ba   :  { %v1713_v14 = vrot.slane %v1712_v39, 1  ;;  %v1743_v47 = vsel %vm747_vm3, %v1627_v51, 0.0  ;;  %v1626_v30 = vmul.f32 %v1486_v49, %v3607_v21  ;;  %v2014_v2 = vsel %vm1225_vm5, %v2013_v32, %v1949_v28 }
 0x3bb   :  { %v4004_v44 = vadd.f32 %v1720_v18, %v1719_v38  ;;  %v1705_v60 = vadd.f32 %v1704_v59, %v1703_v58  ;;  %v1725_v19 = vrot.slane %v1724_v11, 2  ;;  %v1744_v24 = vrot.slane %v1743_v47, 4 }
 0x3bc   :  { %v4006_v62 = vadd.f32 %v1713_v14, %v1712_v39  ;;  %v1736_v13 = vsel %vm747_vm3, %v1626_v30, 0.0  ;;  %v2016_v53 = vsel %vm1227_vm4, %v2015_v54, %v2014_v2  ;;  %v1625_v41 = vmul.f32 %v1479_v45, %v3601_v8 }
 0x3bd   :  { %v4013_v21 = vmul.f32 %v3936_v50, %v4004_v44  ;;  %v1706_v1 = vrot.slane %v1705_v60, 1  ;;  %v1726_v49 = vadd.f32 %v1725_v19, %v1724_v11  ;;  %v1745_v32 = vadd.f32 %v1744_v24, %v1743_v47  ;;  %v1521_v35 = vpop.permute.xlu1 %1520  ;;  %v1514_v8 = vpop.permute.xlu0 %1513 }
 0x3be   :  { %v4017_v28 = vmul.f32 %v3936_v50, %v4006_v62  ;;  %v1737_v46 = vrot.slane %v1736_v13, 4  ;;  %v2018_v40 = vsel %vm1229_vm7, %v2017_v61, %v2016_v53  ;;  %v1729_v54 = vsel %vm747_vm3, %v1625_v41, 0.0 }
 0x3bf   :  { %v4023_v38 = vadd.f32 %v1706_v1, %v1705_v60  ;;  %v1727_v58 = vrot.slane %v1726_v49, 1  ;;  %v1746_v25 = vrot.slane %v1745_v32, 2  ;;  %v2069_v39 = vsel %vm1933_vm9, %v2018_v40, 0.0 }
 0x3c0   :  { %v2025_v51 = vrot.slane %v4017_v28, 7  ;;  %v1738_v18 = vadd.f32 %v1737_v46, %v1736_v13  ;;  %2070 = vadd.xlane.f32.xlu0 %v2069_v39  ;;  %v1730_v59 = vrot.slane %v1729_v54, 4  ;;  %v1628_v11 = vmul.f32 %v1500_v31, %v3609_v22 }
 0x3c1   :  { %v4030_v6 = vmul.f32 %v3936_v50, %v4023_v38  ;;  %v4032_v61 = vadd.f32 %v1727_v58, %v1726_v49  ;;  %v1747_v45 = vadd.f32 %v1746_v25, %v1745_v32  ;;  %v1631_v14 = vmul.f32 %v1521_v35, %v3611_v27  ;;  %v1507_v49 = vpop.permute.xlu1 %1506  ;;  %v1528_v27 = vpop.permute.xlu0 %1527 }
 0x3c2   :  { %v1739_v47 = vrot.slane %v1738_v18, 2  ;;  %v1731_v30 = vadd.f32 %v1730_v59, %v1729_v54  ;;  %v1750_v2 = vsel %vm747_vm3, %v1628_v11, 0.0  ;;  %v1630_v60 = vmul.f32 %v1514_v8, %v3626_v48 }
 0x3c3   :  { %v1748_v19 = vrot.slane %v1747_v45, 1  ;;  %v1751_v24 = vrot.slane %v1750_v2, 4  ;;  %v1771_v13 = vsel %vm747_vm3, %v1631_v14, 0.0  ;;  %v1956_v22 = vmul.f32 %v3936_v50, %v3994_v23 }
 0x3c4   :  { %v1740_v31 = vadd.f32 %v1739_v47, %v1738_v18  ;;  %v1732_v53 = vrot.slane %v1731_v30, 2  ;;  %v1772_v41 = vrot.slane %v1771_v13, 4  ;;  %v1764_v1 = vsel %vm747_vm3, %v1630_v60, 0.0 }
 0x3c5   :  { %v4041_v32 = vadd.f32 %v1748_v19, %v1747_v45  ;;  %v1752_v46 = vadd.f32 %v1751_v24, %v1750_v2  ;;  %v1765_v40 = vrot.slane %v1764_v1, 4  ;;  %v2020_v48 = vsel %vm1225_vm5, %v2019_v36, %v1953_v34  ;;  %v1549_v24 = vpop.permute.xlu1 %1548 }
 0x3c6   :  { %v1741_v54 = vrot.slane %v1740_v31, 1  ;;  %v1733_v35 = vadd.f32 %v1732_v53, %v1731_v30  ;;  %v1773_v8 = vadd.f32 %v1772_v41, %v1771_v13  ;;  %v2021_v58 = vrot.slane %v3984_v3, 6  ;;  %v1542_v13 = vpop.permute.xlu0 %1541 }
 0x3c7   :  { %v4049_v25 = vmul.f32 %v3936_v50, %v4041_v32  ;;  %v1753_v39 = vrot.slane %v1752_v46, 2  ;;  %v1766_v18 = vadd.f32 %v1765_v40, %v1764_v1  ;;  %v2023_v59 = vrot.slane %v1956_v22, 5 }
 0x3c8   :  { %v4051_v11 = vadd.f32 %v1741_v54, %v1740_v31  ;;  %v1734_v45 = vrot.slane %v1733_v35, 1  ;;  %v1774_v14 = vrot.slane %v1773_v8, 2  ;;  %v2022_v15 = vsel %vm1227_vm4, %v2021_v58, %v2020_v48 }
 0x3c9   :  { %v1754_v47 = vadd.f32 %v1753_v39, %v1752_v46  ;;  %v1767_v36 = vrot.slane %v1766_v18, 2  ;;  %v2024_v34 = vsel %vm1229_vm7, %v2023_v59, %v2022_v15  ;;  %v1629_v30 = vmul.f32 %v1507_v49, %v3623_v43 }
 0x3ca   :  { %v4058_v3 = vmul.f32 %v3936_v50, %v4051_v11  ;;  %v4060_v2 = vadd.f32 %v1734_v45, %v1733_v35  ;;  %v1775_v60 = vadd.f32 %v1774_v14, %v1773_v8  ;;  %v2072_v19 = vsel %vm1933_vm9, %v2024_v34, 0.0 }
 0x3cb   :  { %v1755_v22 = vrot.slane %v1754_v47, 1  ;;  %v1768_v31 = vadd.f32 %v1767_v36, %v1766_v18  ;;  %2073 = vadd.xlane.f32.xlu1 %v2072_v19  ;;  %v1757_v53 = vsel %vm747_vm3, %v1629_v30, 0.0  ;;  %v1632_v41 = vmul.f32 %v1528_v27, %v3630_v56  ;;  %v1556_v36 = vpop.permute.xlu0 %1555 }
 0x3cc   :  { %v2031_v43 = vrot.slane %v4058_v3, 7  ;;  %v1961_v1 = vmul.f32 %v3936_v50, %v4060_v2  ;;  %v1776_v49 = vrot.slane %v1775_v60, 1  ;;  %v1758_v46 = vrot.slane %v1757_v53, 4 }
 0x3cd   :  { %v4068_v40 = vadd.f32 %v1755_v22, %v1754_v47  ;;  %v1769_v48 = vrot.slane %v1768_v31, 1  ;;  %v1778_v54 = vsel %vm747_vm3, %v1632_v41, 0.0  ;;  %v1635_v35 = vmul.f32 %v1549_v24, %v3632_v57 }
 0x3ce   :  { %v4072_v8 = vadd.f32 %v1776_v49, %v1775_v60  ;;  %v1759_v58 = vadd.f32 %v1758_v46, %v1757_v53  ;;  %v1779_v39 = vrot.slane %v1778_v54, 4  ;;  %v1634_v56 = vmul.f32 %v1542_v13, %v3646_v26  ;;  %v1535_v26 = vpop.permute.xlu1 %1534 }
 0x3cf   :  { %v4075_v27 = vadd.f32 %v1769_v48, %v1768_v31  ;;  %v1799_v18 = vsel %vm747_vm3, %v1635_v35, 0.0  ;;  %v1960_v59 = vmul.f32 %v3936_v50, %v4032_v61  ;;  %v2026_v45 = vsel %vm1225_vm5, %v2025_v51, %v4030_v6 }
 0x3d0   :  { %v4086_v57 = vmul.f32 %v3936_v50, %v4072_v8  ;;  %v1760_v14 = vrot.slane %v1759_v58, 2  ;;  %v1780_v15 = vadd.f32 %v1779_v39, %v1778_v54  ;;  %v1800_v47 = vrot.slane %v1799_v18, 4 }
 0x3d1   :  { %v1966_v34 = vmul.f32 %v3936_v50, %v4075_v27  ;;  %v1792_v30 = vsel %vm747_vm3, %v1634_v56, 0.0  ;;  %v2027_v3 = vrot.slane %v4013_v21, 6  ;;  %v2029_v60 = vrot.slane %v1960_v59, 5 }
 0x3d2   :  { %v1761_v28 = vadd.f32 %v1760_v14, %v1759_v58  ;;  %v1781_v19 = vrot.slane %v1780_v15, 2  ;;  %v1801_v51 = vadd.f32 %v1800_v47, %v1799_v18  ;;  %v1793_v6 = vrot.slane %v1792_v30, 4 }
 0x3d3   :  { %v2037_v24 = vrot.slane %v1966_v34, 7  ;;  %v2028_v13 = vsel %vm1227_vm4, %v2027_v3, %v2026_v45  ;;  %v1633_v22 = vmul.f32 %v1535_v26, %v3641_v12  ;;  %v1636_v31 = vmul.f32 %v1556_v36, %v3649_v29 }
 0x3d4   :  { %v1762_v53 = vrot.slane %v1761_v28, 1  ;;  %v1782_v41 = vadd.f32 %v1781_v19, %v1780_v15  ;;  %v1802_v49 = vrot.slane %v1801_v51, 2  ;;  %v1794_v46 = vadd.f32 %v1793_v6, %v1792_v30  ;;  %v1577_v48 = vpop.permute.xlu1 %1576  ;;  %v1570_v39 = vpop.permute.xlu0 %1569 }
 0x3d5   :  { %v2030_v54 = vsel %vm1229_vm7, %v2029_v60, %v2028_v13  ;;  %v1785_v21 = vsel %vm747_vm3, %v1633_v22, 0.0  ;;  %v1806_v35 = vsel %vm747_vm3, %v1636_v31, 0.0  ;;  %v1964_v58 = vmul.f32 %v3936_v50, %v4068_v40 }
 0x3d6   :  { %v4100_v56 = vadd.f32 %v1762_v53, %v1761_v28  ;;  %v1783_v12 = vrot.slane %v1782_v41, 1  ;;  %v1803_v18 = vadd.f32 %v1802_v49, %v1801_v51  ;;  %v1795_v29 = vrot.slane %v1794_v46, 2 }
 0x3d7   :  { %v2075_v59 = vsel %vm1933_vm9, %v2030_v54, 0.0  ;;  %v1786_v45 = vrot.slane %v1785_v21, 4  ;;  %v1807_v14 = vrot.slane %v1806_v35, 4  ;;  %v2032_v15 = vsel %vm1225_vm5, %v2031_v43, %v1961_v1 }
 0x3d8   :  { %v1965_v47 = vmul.f32 %v3936_v50, %v4100_v56  ;;  %v4106_v26 = vadd.f32 %v1783_v12, %v1782_v41  ;;  %v1804_v36 = vrot.slane %v1803_v18, 1  ;;  %v1796_v34 = vadd.f32 %v1795_v29, %v1794_v46  ;;  %2076 = vadd.xlane.f32.xlu0 %v2075_v59  ;;  %v1563_v19 = vpop.permute.xlu1 %1562  ;;  %v1584_v41 = vpop.permute.xlu0 %1583 }
 0x3d9   :  { %v1787_v30 = vadd.f32 %v1786_v45, %v1785_v21  ;;  %v1808_v3 = vadd.f32 %v1807_v14, %v1806_v35  ;;  %v2033_v60 = vrot.slane %v4049_v25, 6  ;;  %v2035_v28 = vrot.slane %v1964_v58, 5 }
 0x3da   :  { %v4109_v51 = vadd.f32 %v1804_v36, %v1803_v18  ;;  %v1797_v6 = vrot.slane %v1796_v34, 1  ;;  %v1639_v13 = vmul.f32 %v1577_v48, %v3651_v33  ;;  %v1638_v43 = vmul.f32 %v1570_v39, %v3666_v0 }
 0x3db   :  { %v1788_v1 = vrot.slane %v1787_v30, 2  ;;  %v1809_v22 = vrot.slane %v1808_v3, 2  ;;  %v2034_v31 = vsel %vm1227_vm4, %v2033_v60, %v2032_v15  ;;  %v1968_v53 = vmul.f32 %v3936_v50, %v4106_v26 }
 0x3dc   :  { %v4118_v25 = vmul.f32 %v3936_v50, %v4109_v51  ;;  %v4120_v49 = vadd.f32 %v1797_v6, %v1796_v34  ;;  %v2036_v46 = vsel %vm1229_vm7, %v2035_v28, %v2034_v31  ;;  %v1827_v33 = vsel %vm747_vm3, %v1639_v13, 0.0  ;;  %v1605_v14 = vpop.permute.xlu1 %1604 }
 0x3dd   :  { %v1789_v48 = vadd.f32 %v1788_v1, %v1787_v30  ;;  %v1810_v0 = vadd.f32 %v1809_v22, %v1808_v3  ;;  %v2078_v54 = vsel %vm1933_vm9, %v2036_v46, 0.0  ;;  %v1828_v21 = vrot.slane %v1827_v33, 4  ;;  %v4482_v30 = vld [vmem:[#allocation12_spill] sm:$0xff]  ;;  %v4484_v22 = vld [vmem:[#allocation14_spill] sm:$0xff] }
 0x3de   :  { %v1970_v35 = vmul.f32 %v3936_v50, %v4120_v49  ;;  %2079 = vadd.xlane.f32.xlu0 %v2078_v54  ;;  %v1820_v58 = vsel %vm747_vm3, %v1638_v43, 0.0  ;;  %v2038_v39 = vsel %vm1225_vm5, %v2037_v24, %v1965_v47  ;;  %v2039_v12 = vrot.slane %v4086_v57, 6  ;;  %v1598_v24 = vpop.permute.xlu0 %1597  ;;  %v4483_v43 = vld [vmem:[#allocation13_spill] sm:$0xff] }
 0x3df   :  { %v1790_v18 = vrot.slane %v1789_v48, 1  ;;  %v1811_v29 = vrot.slane %v1810_v0, 1  ;;  %v1829_v59 = vadd.f32 %v1828_v21, %v1827_v33  ;;  %v1821_v45 = vrot.slane %v1820_v58, 4  ;;  %v4485_v21 = vld [vmem:[#allocation16_spill] sm:$0xff] }
 0x3e0   :  { %v2043_v15 = vrot.slane %v1970_v35, 7  ;;  %v2040_v36 = vsel %vm1227_vm4, %v2039_v12, %v2038_v39  ;;  %v2041_v34 = vrot.slane %v1968_v53, 5  ;;  %v1637_v3 = vmul.f32 %v1563_v19, %v4482_v30  ;;  %v1612_v30 = vpop.permute.xlu1 %1611 }
 0x3e1   :  { %v4132_v60 = vadd.f32 %v1790_v18, %v1789_v48  ;;  %v4134_v28 = vadd.f32 %v1811_v29, %v1810_v0  ;;  %v1830_v6 = vrot.slane %v1829_v59, 2  ;;  %v1822_v13 = vadd.f32 %v1821_v45, %v1820_v58 }
 0x3e2   :  { %v2042_v57 = vsel %vm1229_vm7, %v2041_v34, %v2040_v36  ;;  %v1813_v47 = vsel %vm747_vm3, %v1637_v3, 0.0  ;;  %v1640_v1 = vmul.f32 %v1584_v41, %v4483_v43  ;;  %v1643_v31 = vmul.f32 %v1605_v14, %v4484_v22 }
 0x3e3   :  { %v1969_v53 = vmul.f32 %v3936_v50, %v4132_v60  ;;  %v1831_v46 = vadd.f32 %v1830_v6, %v1829_v59  ;;  %v1823_v19 = vrot.slane %v1822_v13, 2  ;;  %v2081_v33 = vsel %vm1933_vm9, %v2042_v57, 0.0 }
 0x3e4   :  { %2082 = vadd.xlane.f32.xlu1 %v2081_v33  ;;  %v1814_v48 = vrot.slane %v1813_v47, 4  ;;  %v1834_v0 = vsel %vm747_vm3, %v1640_v1, 0.0  ;;  %v1855_v54 = vsel %vm747_vm3, %v1643_v31, 0.0  ;;  %v1642_v35 = vmul.f32 %v1598_v24, %v4485_v21  ;;  %v4486_v33 = vld [vmem:[#allocation17_spill] sm:$0xff] }
 0x3e5   :  { %v1832_v58 = vrot.slane %v1831_v46, 1  ;;  %v1824_v39 = vadd.f32 %v1823_v19, %v1822_v13  ;;  %v1835_v41 = vrot.slane %v1834_v0, 4  ;;  %v1856_v12 = vrot.slane %v1855_v54, 4 }
 0x3e6   :  { %v1815_v18 = vadd.f32 %v1814_v48, %v1813_v47  ;;  %v1848_v29 = vsel %vm747_vm3, %v1642_v35, 0.0  ;;  %v1972_v59 = vmul.f32 %v3936_v50, %v4134_v28  ;;  %v2044_v34 = vsel %vm1225_vm5, %v2043_v15, %v1969_v53 }
 0x3e7   :  { %v1825_v45 = vrot.slane %v1824_v39, 1  ;;  %v1836_v14 = vadd.f32 %v1835_v41, %v1834_v0  ;;  %v1857_v36 = vadd.f32 %v1856_v12, %v1855_v54  ;;  %v1849_v6 = vrot.slane %v1848_v29, 4  ;;  %v1591_v54 = vpop.permute.xlu0 %1590 }
 0x3e8   :  { %v1816_v3 = vrot.slane %v1815_v18, 2  ;;  %v2045_v24 = vrot.slane %v4118_v25, 6  ;;  %v2047_v57 = vrot.slane %v1972_v59, 5  ;;  %v4151_v13 = vadd.f32 %v1832_v58, %v1831_v46  ;;  %v4487_v59 = vld [vmem:[#allocation15_spill] sm:$0xff] }
 0x3e9   :  { %v4153_v43 = vadd.f32 %v1825_v45, %v1824_v39  ;;  %v1837_v47 = vrot.slane %v1836_v14, 2  ;;  %v1858_v1 = vrot.slane %v1857_v36, 2  ;;  %v1850_v31 = vadd.f32 %v1849_v6, %v1848_v29 }
 0x3ea   :  { %v1817_v22 = vadd.f32 %v1816_v3, %v1815_v18  ;;  %v2046_v19 = vsel %vm1227_vm4, %v2045_v24, %v2044_v34  ;;  %v1644_v48 = vmul.f32 %v1612_v30, %v4486_v33  ;;  %v1975_v39 = vmul.f32 %v3936_v50, %v4151_v13 }
 0x3eb   :  { %v1974_v15 = vmul.f32 %v3936_v50, %v4153_v43  ;;  %v1838_v53 = vadd.f32 %v1837_v47, %v1836_v14  ;;  %v1859_v0 = vadd.f32 %v1858_v1, %v1857_v36  ;;  %v2048_v25 = vsel %vm1229_vm7, %v2047_v57, %v2046_v19 }
 0x3ec   :  { %v1818_v46 = vrot.slane %v1817_v22, 1  ;;  %v1851_v21 = vrot.slane %v1850_v31, 2  ;;  %v2084_v35 = vsel %vm1933_vm9, %v2048_v25, 0.0  ;;  %v1862_v58 = vsel %vm747_vm3, %v1644_v48, 0.0 }
 0x3ed   :  { %v1839_v41 = vrot.slane %v1838_v53, 1  ;;  %2085 = vadd.xlane.f32.xlu0 %v2084_v35  ;;  %v1863_v12 = vrot.slane %v1862_v58, 4  ;;  %v1641_v45 = vmul.f32 %v1591_v54, %v4487_v59  ;;  %v2049_v14 = vrot.slane %v1974_v15, 7 }
 0x3ee   :  { %v1819_v18 = vadd.f32 %v1818_v46, %v1817_v22  ;;  %v1852_v29 = vadd.f32 %v1851_v21, %v1850_v31  ;;  %v1860_v34 = vrot.slane %v1859_v0, 1  ;;  %v1904_v57 = vsel %vm1225_vm5, %v3979_v10, %v3991_v55 }
 0x3ef   :  { %v1840_v36 = vadd.f32 %v1839_v41, %v1838_v53  ;;  %v1864_v30 = vadd.f32 %v1863_v12, %v1862_v58  ;;  %v1841_v24 = vsel %vm747_vm3, %v1641_v45, 0.0  ;;  %v2051_v31 = vrot.slane %v1975_v39, 6 }
 0x3f0   :  { %v1973_v3 = vmul.f32 %v3936_v50, %v1819_v18  ;;  %v1853_v6 = vrot.slane %v1852_v29, 1  ;;  %v1842_v1 = vrot.slane %v1841_v24, 4  ;;  %v1905_v48 = vsel %vm1227_vm4, %v3976_v42, %v1904_v57 }
 0x3f1   :  { %v1865_v47 = vrot.slane %v1864_v30, 2  ;;  %v1976_v22 = vmul.f32 %v3936_v50, %v1840_v36  ;;  %v1861_v46 = vadd.f32 %v1860_v34, %v1859_v0  ;;  %v4177_v10 = vsel %vm1229_vm7, %v3994_v23, %v1905_v48 }
 0x3f2   :  { %v1854_v19 = vadd.f32 %v1853_v6, %v1852_v29  ;;  %v2050_v33 = vsel %vm1225_vm5, %v2049_v14, %v1973_v3  ;;  %v1843_v53 = vadd.f32 %v1842_v1, %v1841_v24  ;;  %v1901_v55 = vsel %vm1225_vm5, %v3940_v63, %v3968_v37  ;;  %1935 = vst.msk [vmem:[#allocation4 + $0x4] sm:$0xf] %vm1933_vm9, %v4177_v10 }
 0x3f3   :  { %v1866_v15 = vadd.f32 %v1865_v47, %v1864_v30  ;;  %v2052_v25 = vsel %vm1227_vm4, %v2051_v31, %v2050_v33  ;;  %v2053_v54 = vrot.slane %v1976_v22, 5  ;;  %v1902_v42 = vsel %vm1227_vm4, %v3957_v7, %v1901_v55  ;;  %v3134_v30 = vld [vmem:[%s4445_s2] sm:$0xff]  ;;  %s3202_s2 = smov 32  }
 0x3f4   :  { %v1844_v35 = vrot.slane %v1843_v53, 2  ;;  %v1978_v0 = vmul.f32 %v3936_v50, %v1854_v19  ;;  %v4191_v23 = vsel %vm1229_vm7, %v3942_v4, %v1902_v42  ;;  %v1907_v63 = vsel %vm1225_vm5, %v4006_v62, %v4023_v38 }
 0x3f5   :  { %v1867_v21 = vrot.slane %v1866_v15, 1  ;;  %v2054_v58 = vsel %vm1229_vm7, %v2053_v54, %v2052_v25  ;;  %1934 = vst.msk [vmem:[#allocation4] sm:$0xf] %vm1933_vm9, %v4191_v23  ;;  %v1908_v7 = vsel %vm1227_vm4, %v4004_v44, %v1907_v63  ;;  %v1910_v12 = vsel %vm1225_vm5, %v4051_v11, %v4060_v2 }
 0x3f6   :  { %v2087_v39 = vsel %vm1933_vm9, %v2054_v58, 0.0  ;;  %v1845_v41 = vadd.f32 %v1844_v35, %v1843_v53  ;;  %v4205_v4 = vsel %vm1229_vm7, %v4032_v61, %v1908_v7  ;;  %v1911_v62 = vsel %vm1227_vm4, %v4041_v32, %v1910_v12 }
 0x3f7   :  { %v1868_v37 = vadd.f32 %v1867_v21, %v1866_v15  ;;  %2088 = vadd.xlane.f32.xlu1 %v2087_v39  ;;  %v1913_v38 = vsel %vm1225_vm5, %v4075_v27, %v4100_v56  ;;  %v1916_v29 = vsel %vm1225_vm5, %v4120_v49, %v4132_v60  ;;  %1936 = vst.msk [vmem:[#allocation4 + $0x8] sm:$0xf] %vm1933_vm9, %v4205_v4  ;;  %v2055_v49 = vrot.slane %v1978_v0, 7 }
 0x3f8   :  { %v1846_v44 = vrot.slane %v1845_v41, 1  ;;  %v4220_v61 = vsel %vm1229_vm7, %v4068_v40, %v1911_v62  ;;  %v1914_v32 = vsel %vm1227_vm4, %v4072_v8, %v1913_v38  ;;  %v1979_v11 = vmul.f32 %v3936_v50, %v1861_v46 }
 0x3f9   :  { %v1980_v59 = vmul.f32 %v3936_v50, %v1868_v37  ;;  %1937 = vst.msk [vmem:[#allocation4 + $0xc] sm:$0xf] %vm1933_vm9, %v4220_v61  ;;  %v4229_v2 = vsel %vm1229_vm7, %v4106_v26, %v1914_v32  ;;  %v1917_v27 = vsel %vm1227_vm4, %v4109_v51, %v1916_v29  ;;  %v1919_v56 = vsel %vm1225_vm5, %v4153_v43, %v1819_v18 }
 0x3fa   :  { %v1847_v40 = vadd.f32 %v1846_v44, %v1845_v41  ;;  %1938 = vst.msk [vmem:[#allocation4 + $0x10] sm:$0xf] %vm1933_vm9, %v4229_v2  ;;  %v4239_v8 = vsel %vm1229_vm7, %v4134_v28, %v1917_v27  ;;  %v1920_v26 = vsel %vm1227_vm4, %v4151_v13, %v1919_v56  ;;  %v2057_v45 = vrot.slane %v1979_v11, 6 }
 0x3fb   :  { %1939 = vst.msk [vmem:[#allocation4 + $0x14] sm:$0xf] %vm1933_vm9, %v4239_v8  ;;  %v2059_v60 = vrot.slane %v1980_v59, 5  ;;  %v4247_v43 = vsel %vm1229_vm7, %v1840_v36, %v1920_v26 }
 0x3fc   :  { %v1977_v51 = vmul.f32 %v3936_v50, %v1847_v40  ;;  %v1922_v18 = vsel %vm1225_vm5, %v1854_v19, %v1847_v40  ;;  %1940 = vst.msk [vmem:[#allocation4 + $0x18] sm:$0xf] %vm1933_vm9, %v4247_v43 }
 0x3fd   :  { %v1923_v28 = vsel %vm1227_vm4, %v1861_v46, %v1922_v18  ;;  %v4491_v18 = vld [vmem:[#allocation18_spill] sm:$0xff] }
 0x3fe   :  { %v2056_v14 = vsel %vm1225_vm5, %v2055_v49, %v1977_v51  ;;  %v4255_v34 = vsel %vm1229_vm7, %v1868_v37, %v1923_v28  ;;  %v4489_v49 = vld [vmem:[#allocation11_spill] sm:$0xff]  ;;  %v4492_v28 = vld [vmem:[#allocation9_spill] sm:$0xff] }
 0x3ff   :  { %v2058_v13 = vsel %vm1227_vm4, %v2057_v45, %v2056_v14  ;;  %1941 = vst.msk [vmem:[#allocation4 + $0x1c] sm:$0xf] %vm1933_vm9, %v4255_v34  ;;  %v4490_v51 = vld [vmem:[#allocation19_spill] sm:$0xff] }
 0x400   :  { %v2060_v50 = vsel %vm1229_vm7, %v2059_v60, %v2058_v13 }
 0x401   :  { %v2090_v36 = vsel %vm1933_vm9, %v2060_v50, 0.0 }
 0x402   :  { %2091 = vadd.xlane.f32.xlu0 %v2090_v36 }
 0x408   :  { %2102 = vperm.xlu1 %3070, %v3134_v30  }
 0x449   :  { %v2071_v3 = vpop.xlane.xlu0 %2070 }
 0x44a   :  { %v2093_v19 = vmul.f32 0.1, %v2071_v3 }
 0x44c   :  { %v2116_v55 = vrot.slane %v2093_v19, %v3733_v17  ;;  %v4493_v19 = vmov 0.0  }
 0x454   :  { %v2074_v24 = vpop.xlane.xlu1 %2073 }
 0x455   :  { %v2094_v1 = vmul.f32 0.1, %v2074_v24 }
 0x457   :  { %v2120_v53 = vrot.slane %v2094_v1, %v3733_v17 }
 0x459   :  { %v2145_v58 = vsel %vm1225_vm5, %v2120_v53, %v2116_v55 }
 0x461   :  { %v2077_v6 = vpop.xlane.xlu0 %2076 }
 0x462   :  { %v2095_v22 = vmul.f32 0.1, %v2077_v6 }
 0x464   :  { %v2124_v54 = vrot.slane %v2095_v22, %v3733_v17 }
 0x466   :  { %v2146_v0 = vsel %vm1227_vm4, %v2124_v54, %v2145_v58 }
 0x467   :  { %v2080_v57 = vpop.xlane.xlu0 %2079 }
 0x468   :  { %v2096_v33 = vmul.f32 0.1, %v2080_v57 }
 0x46a   :  { %v2128_v21 = vrot.slane %v2096_v33, %v3733_v17 }
 0x46c   :  { %v2147_v37 = vsel %vm1229_vm7, %v2128_v21, %v2146_v0 }
 0x46d   :  { %v2083_v47 = vpop.xlane.xlu1 %2082 }
 0x46e   :  { %v2097_v15 = vmul.f32 0.1, %v2083_v47 }
 0x470   :  { %v2132_v35 = vrot.slane %v2097_v15, %v3733_v17 }
 0x472   :  { %v2149_v7 = vsel %vm2148_vm10, %v2132_v35, %v2147_v37 }
 0x476   :  { %v2086_v31 = vpop.xlane.xlu0 %2085 }
 0x477   :  { %v2098_v25 = vmul.f32 0.1, %v2086_v31 }
 0x479   :  { %v2136_v42 = vrot.slane %v2098_v25, %v3733_v17 }
 0x47b   :  { %v2151_v62 = vsel %vm2150_vm11, %v2136_v42, %v2149_v7 }
 0x480   :  { %v2089_v48 = vpop.xlane.xlu1 %2088 }
 0x481   :  { %v2099_v46 = vmul.f32 0.1, %v2089_v48 }
 0x483   :  { %v2140_v39 = vrot.slane %v2099_v46, %v3733_v17 }
 0x484   :  { %v2103_v12 = vpop.permute.xlu1 %2102 }
 0x485   :  { %v2153_v29 = vsel %vm2152_vm12, %v2140_v39, %v2151_v62  ;;  %vm2104_vm14 = vcmp.ge.s32.totalorder %v3438_v20, %v2103_v12  ;;  %v4488_v20 = vld [vmem:[#allocation10_spill] sm:$0xff] }
 0x48b   :  { %v2092_v63 = vpop.xlane.xlu0 %2091 }
 0x48c   :  { %v2100_v41 = vmul.f32 0.1, %v2092_v63 }
 0x48e   :  { %v2144_v38 = vrot.slane %v2100_v41, %v3733_v17 }
 0x490   :  { %v2155_v44 = vsel %vm2154_vm13, %v2144_v38, %v2153_v29 }
 0x491   :  { %v4281_v59 = vsel %vm2104_vm14, -9999.0, %v2155_v44 }
 0x492   :  { %v2168_v32 = vrot.slane %v4281_v59, %v3404_v5  ;;  %v2161_v11 = vrot.slane %v4281_v59, %v3385_v52  ;;  %v2175_v27 = vrot.slane %v4281_v59, %v3415_v9  ;;  %v2182_v56 = vrot.slane %v4281_v59, %v3428_v16 }
 0x493   :  { %v2189_v40 = vrot.slane %v4281_v59, %v4488_v20  ;;  %v2196_v26 = vrot.slane %v4281_v59, %v4489_v49  ;;  %v4297_v60 = vrot.slane %v4281_v59, %v4490_v51  ;;  %v4301_v45 = vrot.slane %v4281_v59, %v4491_v18 }
 0x494   :  { %2170 = vbcast.lane.b32.xlu1 %v2168_v32, 256  ;;  %2163 = vbcast.lane.b32.xlu0 %v2161_v11, 256  ;;  %v2222_v14 = vrot.slane %v4281_v59, %v4492_v28  ;;  %v2215_v50 = vcombine.high %v4281_v59, %v4281_v59 }
 0x496   :  { %v2230_v13 = vcombine.high %v2222_v14, %v2222_v14  ;;  %v2238_v36 = vrot.slane %v2222_v14, %v4492_v28  ;;  %v2229_v3 = vrot.slane %v2215_v50, %v4492_v28 }
 0x498   :  { %2177 = vbcast.lane.b32.xlu1 %v2175_v27, 256  ;;  %2184 = vbcast.lane.b32.xlu0 %v2182_v56, 256  ;;  %v2252_v30 = vrot.slane %v2230_v13, %v4492_v28  ;;  %v2260_v6 = vcombine.high %v2238_v36, %v2238_v36  ;;  %v2267_v57 = vrot.slane %v2238_v36, %v3385_v52 }
 0x499   :  { %v2231_v1 = vcombine.high %v2229_v3, %v2229_v3  ;;  %v2245_v53 = vrot.slane %v2229_v3, %v4492_v28 }
 0x49a   :  { %v2271_v24 = vrot.slane %v2252_v30, %v3385_v52  ;;  %v2262_v47 = vcombine.high %v2252_v30, %v2252_v30  ;;  %v2275_v15 = vrot.slane %v2260_v6, %v3385_v52 }
 0x49b   :  { %v2259_v55 = vrot.slane %v2231_v1, %v4492_v28  ;;  %v2283_v0 = vrot.slane %v2245_v53, %v3385_v52  ;;  %v2261_v39 = vcombine.high %v2245_v53, %v2245_v53 }
 0x49c   :  { %2191 = vbcast.lane.b32.xlu1 %v2189_v40, 256  ;;  %2198 = vbcast.lane.b32.xlu0 %v2196_v26, 256  ;;  %v2279_v46 = vrot.slane %v2262_v47, %v3385_v52 }
 0x49d   :  { %v2287_v41 = vrot.slane %v2259_v55, %v3385_v52  ;;  %v2263_v7 = vcombine.high %v2259_v55, %v2259_v55  ;;  %v2291_v44 = vrot.slane %v2261_v39, %v3385_v52 }
 0x4a0   :  { %2205 = vbcast.lane.b32.xlu1 %v4297_v60, 256  ;;  %2212 = vbcast.lane.b32.xlu0 %v4301_v45, 256 }
 0x4a4   :  { %2397 = vbcast.lane.b32.xlu1 %v2168_v32, 256  ;;  %2390 = vbcast.lane.b32.xlu0 %v2161_v11, 256 }
 0x4a8   :  { %2404 = vbcast.lane.b32.xlu1 %v2175_v27, 256  ;;  %2411 = vbcast.lane.b32.xlu0 %v2182_v56, 256  ;;  %v2295_v56 = vrot.slane %v2263_v7, %v3385_v52 }
 0x4ac   :  { %2418 = vbcast.lane.b32.xlu1 %v2189_v40, 256  ;;  %2425 = vbcast.lane.b32.xlu0 %v2196_v26, 256 }
 0x506   :  { %v2171_v22 = vpop.permute.xlu1 %2170  ;;  %v2164_v31 = vpop.permute.xlu0 %2163 }
 0x507   :  { %vm2305_vm0 = vcmp.ge.f32.partialorder %v2271_v24, %v2171_v22  ;;  %vm2304_vm1 = vcmp.ge.f32.partialorder %v2267_v57, %v2164_v31 }
 0x508   :  { %v2921_v33 = vsel %vm2305_vm0, 1.0, %v4493_v19  ;;  %v2920_v48 = vsel %vm2304_vm1, 1.0, %v4493_v19 }
 0x509   :  { %v2332_v25 = vsel %vm2328_vm15, %v2921_v33, 0.0  ;;  %v2329_v54 = vsel %vm2328_vm15, %v2920_v48, 0.0  ;;  %v2354_v32 = vmul.f32 %v2921_v33, %v2271_v24  ;;  %v2353_v30 = vmul.f32 %v2920_v48, %v2267_v57 }
 0x50a   :  { %v2178_v21 = vpop.permute.xlu1 %2177  ;;  %2333 = vadd.xlane.f32.xlu0 %v2332_v25  ;;  %2330 = vadd.xlane.f32.xlu1 %v2329_v54  ;;  %v2185_v35 = vpop.permute.xlu0 %2184 }
 0x50b   :  { %vm2306_vm2 = vcmp.ge.f32.partialorder %v2275_v15, %v2178_v21  ;;  %vm2307_vm6 = vcmp.ge.f32.partialorder %v2279_v46, %v2185_v35  ;;  %v2364_v50 = vsel %vm2328_vm15, %v2354_v32, 0.0  ;;  %v2361_v31 = vsel %vm2328_vm15, %v2353_v30, 0.0 }
 0x50c   :  { %v2922_v58 = vsel %vm2306_vm2, 1.0, %v4493_v19  ;;  %v2923_v42 = vsel %vm2307_vm6, 1.0, %v4493_v19 }
 0x50d   :  { %v2335_v63 = vsel %vm2328_vm15, %v2922_v58, 0.0  ;;  %v2338_v37 = vsel %vm2328_vm15, %v2923_v42, 0.0  ;;  %v2355_v14 = vmul.f32 %v2922_v58, %v2275_v15  ;;  %v2356_v3 = vmul.f32 %v2923_v42, %v2279_v46 }
 0x50e   :  { %v2192_v12 = vpop.permute.xlu1 %2191  ;;  %2336 = vadd.xlane.f32.xlu0 %v2335_v63  ;;  %2339 = vadd.xlane.f32.xlu1 %v2338_v37  ;;  %v2199_v62 = vpop.permute.xlu0 %2198 }
 0x50f   :  { %vm2308_vm8 = vcmp.ge.f32.partialorder %v2283_v0, %v2192_v12  ;;  %vm2309_vm14 = vcmp.ge.f32.partialorder %v2287_v41, %v2199_v62  ;;  %v2367_v6 = vsel %vm2328_vm15, %v2355_v14, 0.0  ;;  %v2370_v22 = vsel %vm2328_vm15, %v2356_v3, 0.0 }
 0x510   :  { %v2924_v38 = vsel %vm2308_vm8, 1.0, %v4493_v19  ;;  %v2925_v29 = vsel %vm2309_vm14, 1.0, %v4493_v19 }
 0x511   :  { %v2341_v11 = vsel %vm2328_vm15, %v2924_v38, 0.0  ;;  %v2344_v27 = vsel %vm2328_vm15, %v2925_v29, 0.0  ;;  %v2357_v47 = vmul.f32 %v2924_v38, %v2283_v0  ;;  %v2358_v1 = vmul.f32 %v2925_v29, %v2287_v41 }
 0x512   :  { %v2206_v40 = vpop.permute.xlu1 %2205  ;;  %2342 = vadd.xlane.f32.xlu0 %v2341_v11  ;;  %2345 = vadd.xlane.f32.xlu1 %v2344_v27  ;;  %v2213_v26 = vpop.permute.xlu0 %2212 }
 0x513   :  { %vm2310_vm0 = vcmp.ge.f32.partialorder %v2291_v44, %v2206_v40  ;;  %vm2311_vm1 = vcmp.ge.f32.partialorder %v2295_v56, %v2213_v26  ;;  %v2376_v53 = vsel %vm2328_vm15, %v2358_v1, 0.0  ;;  %v2373_v57 = vsel %vm2328_vm15, %v2357_v47, 0.0 }
 0x514   :  { %v2926_v28 = vsel %vm2310_vm0, 1.0, %v4493_v19  ;;  %v2927_v36 = vsel %vm2311_vm1, 1.0, %v4493_v19 }
 0x515   :  { %v2347_v13 = vsel %vm2328_vm15, %v2926_v28, 0.0  ;;  %v2350_v24 = vsel %vm2328_vm15, %v2927_v36, 0.0  ;;  %v2359_v33 = vmul.f32 %v2926_v28, %v2291_v44  ;;  %v2360_v15 = vmul.f32 %v2927_v36, %v2295_v56 }
 0x516   :  { %2348 = vadd.xlane.f32.xlu0 %v2347_v13  ;;  %2365 = vadd.xlane.f32.xlu1 %v2364_v50  ;;  %v4348_v54 = vpop.permute.xlu1 %2397  ;;  %v2391_v46 = vpop.permute.xlu0 %2390 }
 0x517   :  { %v2382_v48 = vsel %vm2328_vm15, %v2360_v15, 0.0  ;;  %v2379_v25 = vsel %vm2328_vm15, %v2359_v33, 0.0 }
 0x51a   :  { %2368 = vadd.xlane.f32.xlu1 %v2367_v6  ;;  %2351 = vadd.xlane.f32.xlu0 %v2350_v24  ;;  %v2405_v55 = vpop.permute.xlu1 %2404  ;;  %v4350_v21 = vpop.permute.xlu0 %2411 }
 0x51e   :  { %2371 = vadd.xlane.f32.xlu1 %v2370_v22  ;;  %2362 = vadd.xlane.f32.xlu0 %v2361_v31  ;;  %v2419_v35 = vpop.permute.xlu1 %2418  ;;  %v4352_v58 = vpop.permute.xlu0 %2425 }
 0x522   :  { %2377 = vadd.xlane.f32.xlu1 %v2376_v53  ;;  %2374 = vadd.xlane.f32.xlu0 %v2373_v57 }
 0x526   :  { %2383 = vadd.xlane.f32.xlu1 %v2382_v48  ;;  %2380 = vadd.xlane.f32.xlu0 %v2379_v25 }
 0x537   :  { %2432 = vbcast.lane.b32.xlu1 %v4297_v60, 256 }
 0x53c   :  { %2439 = vbcast.lane.b32.xlu0 %v4301_v45, 256 }
 0x593   :  { %v2331_v42 = vpop.xlane.xlu1 %2330  ;;  %v2334_v0 = vpop.xlane.xlu0 %2333 }
 0x594   :  { %v2450_v60 = vmul.f32 %v4348_v54, %v2334_v0  ;;  %v2449_v62 = vmul.f32 %v2391_v46, %v2331_v42 }
 0x596   :  { %v2458_v32 = vadd.f32 1.0, %v2450_v60  ;;  %v2457_v27 = vadd.f32 1.0, %v2449_v62 }
 0x597   :  { %v2340_v39 = vpop.xlane.xlu1 %2339  ;;  %v2337_v63 = vpop.xlane.xlu0 %2336 }
 0x598   :  { %v2451_v45 = vmul.f32 %v2405_v55, %v2337_v63  ;;  %v2452_v38 = vmul.f32 %v4350_v21, %v2340_v39 }
 0x59a   :  { %v2459_v11 = vadd.f32 1.0, %v2451_v45  ;;  %v2460_v56 = vadd.f32 1.0, %v2452_v38 }
 0x59b   :  { %v2346_v37 = vpop.xlane.xlu1 %2345  ;;  %v2343_v41 = vpop.xlane.xlu0 %2342 }
 0x59c   :  { %v2454_v40 = vmul.f32 %v4352_v58, %v2346_v37  ;;  %v2453_v26 = vmul.f32 %v2419_v35, %v2343_v41 }
 0x59e   :  { %v2462_v3 = vadd.f32 1.0, %v2454_v40  ;;  %v2461_v6 = vadd.f32 1.0, %v2453_v26 }
 0x59f   :  { %v2366_v7 = vpop.xlane.xlu1 %2365  ;;  %v2349_v12 = vpop.xlane.xlu0 %2348 }
 0x5a0   :  { %vm2466_vm15 = vcmp.gt.f32.partialorder %v2458_v32, %v2366_v7 }
 0x5a1   :  { %v2929_v13 = vsel %vm2466_vm15, 1.0, %v4493_v19 }
 0x5a3   :  { %v2369_v29 = vpop.xlane.xlu1 %2368  ;;  %v2352_v44 = vpop.xlane.xlu0 %2351 }
 0x5a4   :  { %vm2467_vm2 = vcmp.gt.f32.partialorder %v2459_v11, %v2369_v29 }
 0x5a5   :  { %v2930_v50 = vsel %vm2467_vm2, 1.0, %v4493_v19  ;;  %vm2561_vm2 = vcmask 31744  }
 0x5a6   :  { %v2567_v63 = vmul.f32 %v2930_v50, %v2405_v55 }
 0x5a7   :  { %v2372_v28 = vpop.xlane.xlu1 %2371  ;;  %v2363_v14 = vpop.xlane.xlu0 %2362 }
 0x5a8   :  { %vm2468_vm6 = vcmp.gt.f32.partialorder %v2460_v56, %v2372_v28  ;;  %vm2465_vm8 = vcmp.gt.f32.partialorder %v2457_v27, %v2363_v14 }
 0x5a9   :  { %v2931_v36 = vsel %vm2468_vm6, 1.0, %v4493_v19  ;;  %v2928_v30 = vsel %vm2465_vm8, 1.0, %v4493_v19 }
 0x5aa   :  { %v3076_v24 = vpack.i.bf16 %v2931_v36, %v2930_v50  ;;  %v3071_v47 = vpack.i.bf16 %v2929_v13, %v2928_v30  ;;  %v2565_v48 = vmul.f32 %v2928_v30, %v2391_v46  ;;  %v2566_v46 = vmul.f32 %v2929_v13, %v4348_v54 }
 0x5ab   :  { %v2378_v1 = vpop.xlane.xlu1 %2377  ;;  %v2375_v22 = vpop.xlane.xlu0 %2374  ;;  %v2568_v55 = vmul.f32 %v2931_v36, %v4350_v21 }
 0x5ac   :  { %vm2470_vm14 = vcmp.gt.f32.partialorder %v2462_v3, %v2378_v1  ;;  %vm2469_vm0 = vcmp.gt.f32.partialorder %v2461_v6, %v2375_v22  ;;  %3077 = vperm.xlu0 %3069, %v3076_v24   ;;  %3072 = vperm.xlu1 %3070, %v3071_v47  }
 0x5ad   :  { %v2933_v31 = vsel %vm2470_vm14, 1.0, %v4493_v19  ;;  %v2932_v33 = vsel %vm2469_vm0, 1.0, %v4493_v19 }
 0x5ae   :  { %v3081_v15 = vpack.i.bf16 %v2933_v31, %v2932_v33  ;;  %v2569_v45 = vmul.f32 %v2932_v33, %v2419_v35 }
 0x5af   :  { %v2384_v53 = vpop.xlane.xlu1 %2383  ;;  %v2381_v57 = vpop.xlane.xlu0 %2380 }
 0x5b0   :  { %3082 = vperm.xlu1 %3070, %v3081_v15  }
 0x5b3   :  { %v2433_v25 = vpop.permute.xlu1 %2432  ;;  %v2440_v42 = vpop.permute.xlu0 %2439 }
 0x5b4   :  { %v2455_v0 = vmul.f32 %v2433_v25, %v2349_v12  ;;  %v2456_v39 = vmul.f32 %v2440_v42, %v2352_v44  ;;  %2582 = vperm.xlu1 %3070, %v2565_v48   ;;  %v2570_v12 = vmul.f32 %v2933_v31, %v4352_v58 }
 0x5b6   :  { %v2463_v37 = vadd.f32 1.0, %v2455_v0  ;;  %v2464_v41 = vadd.f32 1.0, %v2456_v39 }
 0x5b8   :  { %vm2471_vm1 = vcmp.gt.f32.partialorder %v2463_v37, %v2381_v57  ;;  %vm2472_vm15 = vcmp.gt.f32.partialorder %v2464_v41, %v2384_v53  ;;  %2588 = vperm.xlu1 %3070, %v2567_v63  }
 0x5b9   :  { %v2934_v7 = vsel %vm2471_vm1, 1.0, %v4493_v19  ;;  %v2935_v60 = vsel %vm2472_vm15, 1.0, %v4493_v19 }
 0x5ba   :  { %v3086_v62 = vpack.i.bf16 %v2935_v60, %v2934_v7  ;;  %v2571_v38 = vmul.f32 %v2934_v7, %v2433_v25  ;;  %v2572_v29 = vmul.f32 %v2935_v60, %v2440_v42 }
 0x5bc   :  { %2594 = vperm.xlu1 %3070, %v2569_v45   ;;  %3087 = vperm.xlu0 %3069, %v3086_v62  }
 0x5c0   :  { %2600 = vperm.xlu1 %3070, %v2571_v38   ;;  %2585 = vperm.xlu0 %3069, %v2566_v46  }
 0x5c4   :  { %2591 = vperm.xlu0 %3069, %v2568_v55  }
 0x5c8   :  { %2597 = vperm.xlu0 %3069, %v2570_v12  }
 0x5cc   :  { %2603 = vperm.xlu0 %3069, %v2572_v29  }
 0x627   :  { %v3073_v44 = vpop.permute.xlu1 %3072  ;;  %v3078_v32 = vpop.permute.xlu0 %3077 }
 0x628   :  { %v3075_v19 = vunpack.i.h.bf16 %v3073_v44  ;;  %v3074_v35 = vunpack.i.l.bf16 %v3073_v44  ;;  %v3079_v11 = vunpack.i.l.bf16 %v3078_v32  ;;  %v3080_v26 = vunpack.i.h.bf16 %v3078_v32 }
 0x62a   :  { %v2528_v27 = vrot.slane %v3075_v19, %v3733_v17  ;;  %v2524_v54 = vrot.slane %v3074_v35, %v3733_v17  ;;  %v2532_v40 = vrot.slane %v3079_v11, %v3733_v17  ;;  %v2536_v13 = vrot.slane %v3080_v26, %v3733_v17 }
 0x62b   :  { %v3083_v56 = vpop.permute.xlu1 %3082 }
 0x62c   :  { %v2553_v21 = vsel %vm1225_vm5, %v2528_v27, %v2524_v54  ;;  %v3084_v28 = vunpack.i.l.bf16 %v3083_v56  ;;  %v3085_v50 = vunpack.i.h.bf16 %v3083_v56 }
 0x62d   :  { %v2554_v58 = vsel %vm1227_vm4, %v2532_v40, %v2553_v21 }
 0x62e   :  { %v2540_v36 = vrot.slane %v3084_v28, %v3733_v17  ;;  %v2555_v30 = vsel %vm1229_vm7, %v2536_v13, %v2554_v58  ;;  %v2544_v3 = vrot.slane %v3085_v50, %v3733_v17 }
 0x62f   :  { %v2583_v14 = vpop.permute.xlu1 %2582 }
 0x630   :  { %v2556_v24 = vsel %vm2148_vm10, %v2540_v36, %v2555_v30  ;;  %v2608_v57 = vrot.slane %v2583_v14, %v3733_v17 }
 0x631   :  { %v2557_v53 = vsel %vm2150_vm11, %v2544_v3, %v2556_v24 }
 0x633   :  { %v2589_v47 = vpop.permute.xlu1 %2588 }
 0x634   :  { %v2616_v37 = vrot.slane %v2589_v47, %v3733_v17 }
 0x637   :  { %v3088_v6 = vpop.permute.xlu0 %3087  ;;  %v2595_v0 = vpop.permute.xlu1 %2594 }
 0x638   :  { %v3090_v1 = vunpack.i.h.bf16 %v3088_v6  ;;  %v3089_v22 = vunpack.i.l.bf16 %v3088_v6  ;;  %v2624_v62 = vrot.slane %v2595_v0, %v3733_v17 }
 0x63a   :  { %v2552_v31 = vrot.slane %v3090_v1, %v3733_v17  ;;  %v2548_v33 = vrot.slane %v3089_v22, %v3733_v17 }
 0x63b   :  { %v2586_v15 = vpop.permute.xlu0 %2585  ;;  %v2601_v38 = vpop.permute.xlu1 %2600 }
 0x63c   :  { %v2612_v48 = vrot.slane %v2586_v15, %v3733_v17  ;;  %v2558_v25 = vsel %vm2152_vm12, %v2548_v33, %v2557_v53  ;;  %v2632_v44 = vrot.slane %v2601_v38, %v3733_v17 }
 0x63d   :  { %v2559_v42 = vsel %vm2154_vm13, %v2552_v31, %v2558_v25 }
 0x63e   :  { %v2637_v39 = vsel %vm1225_vm5, %v2612_v48, %v2608_v57  ;;  %v2562_v63 = vsel %vm2561_vm2, %v2559_v42, 0.0 }
 0x63f   :  { %v2592_v41 = vpop.permute.xlu0 %2591  ;;  %2563 = vadd.xlane.f32.xlu1 %v2562_v63  ;;  %v2638_v60 = vsel %vm1227_vm4, %v2616_v37, %v2637_v39 }
 0x640   :  { %v2620_v7 = vrot.slane %v2592_v41, %v3733_v17 }
 0x642   :  { %v2639_v45 = vsel %vm1229_vm7, %v2620_v7, %v2638_v60 }
 0x643   :  { %v2598_v46 = vpop.permute.xlu0 %2597  ;;  %v2640_v12 = vsel %vm2148_vm10, %v2624_v62, %v2639_v45 }
 0x644   :  { %v2628_v55 = vrot.slane %v2598_v46, %v3733_v17 }
 0x646   :  { %v2641_v29 = vsel %vm2150_vm11, %v2628_v55, %v2640_v12 }
 0x647   :  { %v2604_v32 = vpop.permute.xlu0 %2603  ;;  %v2642_v35 = vsel %vm2152_vm12, %v2632_v44, %v2641_v29 }
 0x648   :  { %v2636_v19 = vrot.slane %v2604_v32, %v3733_v17 }
 0x64a   :  { %v2643_v11 = vsel %vm2154_vm13, %v2636_v19, %v2642_v35 }
 0x64b   :  { %v2645_v27 = vsel %vm2561_vm2, %v2643_v11, 0.0 }
 0x64c   :  { %2646 = vadd.xlane.f32.xlu0 %v2645_v27 }
 0x6c8   :  { %v2564_v54 = vpop.xlane.xlu1 %2563 }
 0x6c9   :  { %3132 = vrcp.f32 %v2564_v54 }
 0x6d5   :  { %v2647_v56 = vpop.xlane.xlu0 %2646 }
 0x6d6   :  { %v3133_v40 = vpop.eup %3132  ;;  %v2936_v21 = vadd.f32 -1.0, %v2647_v56 }
 0x6d8   :  { %v2650_v26 = vmul.f32 %v3133_v40, %v2936_v21 }
 0x6da   :  { %v2651_v28 = vsub.f32 %v4281_v59, %v2650_v26 }
 0x6dc   :  { %v2652_v58 = vmax.f32 %v2651_v28, 0.0 }
 0x6de   :  { %v2663_v14 = vrot.slane %v2652_v58, %v3404_v5  ;;  %v2656_v17 = vrot.slane %v2652_v58, %v3385_v52  ;;  %v2670_v13 = vrot.slane %v2652_v58, %v3415_v9  ;;  %v2677_v50 = vrot.slane %v2652_v58, %v3428_v16 }
 0x6df   :  { %v2684_v36 = vrot.slane %v2652_v58, %v4488_v20  ;;  %v2691_v30 = vrot.slane %v2652_v58, %v4489_v49  ;;  %v2698_v3 = vrot.slane %v2652_v58, %v4490_v51  ;;  %v2705_v5 = vrot.slane %v2652_v58, %v4491_v18 }
 0x6e0   :  { %2665 = vbcast.lane.b32.xlu1 %v2663_v14, 256  ;;  %2658 = vbcast.lane.b32.xlu0 %v2656_v17, 256 }
 0x6e4   :  { %2672 = vbcast.lane.b32.xlu1 %v2670_v13, 256  ;;  %2679 = vbcast.lane.b32.xlu0 %v2677_v50, 256 }
 0x6e8   :  { %2686 = vbcast.lane.b32.xlu1 %v2684_v36, 256  ;;  %2693 = vbcast.lane.b32.xlu0 %v2691_v30, 256 }
 0x6ec   :  { %2700 = vbcast.lane.b32.xlu1 %v2698_v3, 256  ;;  %2707 = vbcast.lane.b32.xlu0 %v2705_v5, 256 }
 0x6f0   :  { %2791 = vrot.lane.b32.xlu1 %v2652_v58, %s3202_s2  ;;  %2796 = vrot.lane.b32.xlu0 %v4281_v59, %s3203_s28 }
 0x6f1   :  { %3146 = shalt.err (!%p3143_p4)
}
 0x6f2   :  { %s3206_s3 = smov 64   ;;  %s3207_s12 = smov 4  }
 0x6f3   :  { %2824 = dma.vmem_to_hbm [thread:$0]  %s2819_s30, 512, %s4451_s8, [#allocation5], %s3206_s3, %s3206_s3, %s3207_s12  }
 0x6f4   :  { %s3155_s15 = scalar_lea.vmem %s2807_s4, 512  ;;  %p3160_p6 = scmp.lt.s32.totalorder %s2807_s4, %s2807_s4 }
 0x6f5   :  { %p3156_p5 = scmp.ne.s32.totalorder %s2807_s4, %s3155_s15  ;;  %p3161_p7 = scmp.lt.s32.totalorder %s3155_s15, %s3155_s15 }
 0x6f7   :  { %p3162_p8 = por %p3161_p7, %p3160_p6 }
 0x6f9   :  { %p3163_p9 = pnand %p3162_p8, %p3156_p5 }
 0x6fb   :  { %3166 = shalt.err (!%p3163_p9)
}
 0x6fc   :  { %2812 = dma.vmem_to_hbm [thread:$0]  %s2807_s4, 512, %s4450_s7, [#allocation3], %s3206_s3, %s3206_s3, %s3207_s12  }
 0x6fd   :  { %s3208_s7 = smov [#allocation6]  }
 0x6fe   :  { %s2831_s8 = sshll.u32 %s3208_s7, 4  ;;  %s2832_s8 = int_to_ptr.vmem [resolvable:$true] %s2831_s8 }
 0x6ff   :  { %s3175_s18 = scalar_lea.vmem %s2832_s8, 128  ;;  %p3180_p11 = scmp.lt.s32.totalorder %s2832_s8, %s2832_s8 }
 0x700   :  { %p3176_p10 = scmp.ne.s32.totalorder %s2832_s8, %s3175_s18  ;;  %p3181_p12 = scmp.lt.s32.totalorder %s3175_s18, %s3175_s18 }
 0x702   :  { %p3182_p13 = por %p3181_p12, %p3180_p11 }
 0x704   :  { %p3183_p0 = pnand %p3182_p13, %p3176_p10 }
 0x752   :  { %v2666_v52 = vpop.permute.xlu1 %2665  ;;  %v2659_v9 = vpop.permute.xlu0 %2658 }
 0x753   :  { %v2710_v16 = vmul.f32 %v2666_v52, %v4177_v10  ;;  %v2709_v59 = vmul.f32 %v2659_v9, %v4191_v23 }
 0x755   :  { %v2724_v20 = vsel %vm1933_vm9, %v2710_v16, 0.0  ;;  %v2717_v49 = vsel %vm1933_vm9, %v2709_v59, 0.0 }
 0x756   :  { %v2725_v51 = vrot.slane %v2724_v20, 4  ;;  %v2718_v18 = vrot.slane %v2717_v49, 4  ;;  %v2673_v6 = vpop.permute.xlu1 %2672  ;;  %v2680_v24 = vpop.permute.xlu0 %2679 }
 0x757   :  { %v2711_v47 = vmul.f32 %v2673_v6, %v4205_v4  ;;  %v2712_v1 = vmul.f32 %v2680_v24, %v4220_v61 }
 0x758   :  { %v2726_v22 = vadd.f32 %v2725_v51, %v2724_v20  ;;  %v2719_v31 = vadd.f32 %v2718_v18, %v2717_v49 }
 0x759   :  { %v2731_v33 = vsel %vm1933_vm9, %v2711_v47, 0.0  ;;  %v2738_v10 = vsel %vm1933_vm9, %v2712_v1, 0.0 }
 0x75a   :  { %v2727_v15 = vrot.slane %v2726_v22, 2  ;;  %v2720_v23 = vrot.slane %v2719_v31, 2  ;;  %v2732_v53 = vrot.slane %v2731_v33, 4  ;;  %v2739_v57 = vrot.slane %v2738_v10, 4  ;;  %v2687_v48 = vpop.permute.xlu1 %2686  ;;  %v2694_v25 = vpop.permute.xlu0 %2693 }
 0x75b   :  { %v2713_v42 = vmul.f32 %v2687_v48, %v4229_v2  ;;  %v2714_v0 = vmul.f32 %v2694_v25, %v4239_v8 }
 0x75c   :  { %v2728_v39 = vadd.f32 %v2727_v15, %v2726_v22  ;;  %v2721_v4 = vadd.f32 %v2720_v23, %v2719_v31  ;;  %v2733_v63 = vadd.f32 %v2732_v53, %v2731_v33  ;;  %v2740_v61 = vadd.f32 %v2739_v57, %v2738_v10 }
 0x75d   :  { %v2745_v37 = vsel %vm1933_vm9, %v2713_v42, 0.0  ;;  %v2752_v41 = vsel %vm1933_vm9, %v2714_v0, 0.0 }
 0x75e   :  { %v2729_v7 = vrot.slane %v2728_v39, 1  ;;  %v2722_v60 = vrot.slane %v2721_v4, 1  ;;  %v2734_v45 = vrot.slane %v2733_v63, 2  ;;  %v2741_v62 = vrot.slane %v2740_v61, 2  ;;  %v2701_v46 = vpop.permute.xlu1 %2700  ;;  %v2708_v38 = vpop.permute.xlu0 %2707 }
 0x75f   :  { %v2746_v55 = vrot.slane %v2745_v37, 4  ;;  %v2753_v12 = vrot.slane %v2752_v41, 4  ;;  %v2715_v2 = vmul.f32 %v2701_v46, %v4247_v43  ;;  %v2716_v8 = vmul.f32 %v2708_v38, %v4255_v34 }
 0x760   :  { %v2730_v29 = vadd.f32 %v2729_v7, %v2728_v39  ;;  %v2735_v44 = vadd.f32 %v2734_v45, %v2733_v63  ;;  %v2742_v32 = vadd.f32 %v2741_v62, %v2740_v61  ;;  %v2723_v54 = vadd.f32 %v2722_v60, %v2721_v4 }
 0x761   :  { %v2747_v19 = vadd.f32 %v2746_v55, %v2745_v37  ;;  %v2754_v35 = vadd.f32 %v2753_v12, %v2752_v41  ;;  %v2759_v11 = vsel %vm1933_vm9, %v2715_v2, 0.0  ;;  %v2766_v27 = vsel %vm1933_vm9, %v2716_v8, 0.0 }
 0x762   :  { %v2736_v56 = vrot.slane %v2735_v44, 1  ;;  %v2743_v40 = vrot.slane %v2742_v32, 1  ;;  %v2760_v21 = vrot.slane %v2759_v11, 4  ;;  %v2767_v58 = vrot.slane %v2766_v27, 4  ;;  %v2792_v10 = vpop.permute.xlu1 %2791  ;;  %v2797_v15 = vpop.permute.xlu0 %2796 }
 0x763   :  { %v2748_v26 = vrot.slane %v2747_v19, 2  ;;  %v2755_v28 = vrot.slane %v2754_v35, 2  ;;  %v2781_v50 = vsel %vm1225_vm5, %v2730_v29, %v2723_v54  ;;  %vm2794_vm5 = vcmask 294144  }
 0x764   :  { %v2737_v14 = vadd.f32 %v2736_v56, %v2735_v44  ;;  %v2761_v43 = vadd.f32 %v2760_v21, %v2759_v11  ;;  %v2768_v13 = vadd.f32 %v2767_v58, %v2766_v27  ;;  %v2744_v36 = vadd.f32 %v2743_v40, %v2742_v32 }
 0x765   :  { %v2749_v17 = vadd.f32 %v2748_v26, %v2747_v19  ;;  %v2756_v34 = vadd.f32 %v2755_v28, %v2754_v35 }
 0x766   :  { %v2762_v30 = vrot.slane %v2761_v43, 2  ;;  %v2782_v3 = vsel %vm1227_vm4, %v2737_v14, %v2781_v50  ;;  %v2769_v9 = vrot.slane %v2768_v13, 2  ;;  %vm2799_vm4 = vcmask 326944  }
 0x767   :  { %v2750_v5 = vrot.slane %v2749_v17, 1  ;;  %v2757_v52 = vrot.slane %v2756_v34, 1  ;;  %v2783_v51 = vsel %vm1229_vm7, %v2744_v36, %v2782_v3 }
 0x768   :  { %v2763_v16 = vadd.f32 %v2762_v30, %v2761_v43  ;;  %v2770_v49 = vadd.f32 %v2769_v9, %v2768_v13 }
 0x769   :  { %v2751_v59 = vadd.f32 %v2750_v5, %v2749_v17  ;;  %v2758_v20 = vadd.f32 %v2757_v52, %v2756_v34 }
 0x76a   :  { %v2764_v18 = vrot.slane %v2763_v16, 1  ;;  %v2771_v6 = vrot.slane %v2770_v49, 1 }
 0x76b   :  { %v2784_v24 = vsel %vm2148_vm10, %v2751_v59, %v2783_v51 }
 0x76c   :  { %v2765_v47 = vadd.f32 %v2764_v18, %v2763_v16  ;;  %v2772_v1 = vadd.f32 %v2771_v6, %v2770_v49  ;;  %v2785_v22 = vsel %vm2150_vm11, %v2758_v20, %v2784_v24 }
 0x76e   :  { %v2786_v31 = vsel %vm2152_vm12, %v2765_v47, %v2785_v22 }
 0x76f   :  { %v2787_v33 = vsel %vm2154_vm13, %v2772_v1, %v2786_v31 }
 0x770   :  { %2789 = vst.msk [vmem:[#allocation6] sm:$0xff] %vm747_vm3, %v2787_v33 }
 0x771   :  { %2795 = vst.msk [vmem:[#allocation6] sm:$0xff] %vm2794_vm5, %v2792_v10 }
 0x772   :  { %2800 = vst.msk [vmem:[#allocation6] sm:$0xff] %vm2799_vm4, %v2797_v15 }
 0x773   :  { %3186 = shalt.err (!%p3183_p0)
}
 0x774   :  { %2834 = dma.vmem_to_hbm [thread:$0]  %s2832_s8, 128, %s4452_s9, [#allocation5]  }
 0x775   :  { %3195 = dma.done.wait [#allocation3], 512  }
 0x776   :  { %3196 = vsyncadd [#allocation3], 4294966784 }
 0x777   :  { %3197 = dma.done.wait [#allocation5], 640  }
 0x778   :  { %3198 = vsyncadd [#allocation5], 4294966656 }
 0x779   :  { %2844 = vsyncpa [#allocation3], 1 }
 0x77a   :  { %2845 = vsyncpa [#allocation5], 1 }

</bundles_post_ra>
